<compile_context>
chip_gen: v7x
topology: tpu7x:2x2x1
jax: 0.10.0
libtpu: 0.0.40
codegen_flags: <defaults>
</compile_context>

<pallas_src>
import math
import functools

import jax
import jax.numpy as jnp
from jax import lax
from jax.experimental import pallas as pl
from jax.experimental.pallas import tpu as pltpu

_EPS = 1e-5


# ----------------------------------------------------------------------------
# Per-generation configuration (VMEM budget + tile targets)
# ----------------------------------------------------------------------------

def _tpu_config():
    vmem_cap = 128 * 1024 * 1024
    try:
        info = pltpu.get_tpu_info()
        vmem_cap = int(getattr(info, "vmem_capacity_bytes", vmem_cap))
    except Exception:
        pass
    if vmem_cap <= 64 * 1024 * 1024:
        # v7x-class: 64 MiB VMEM per TC -> conservative tiles / scoped limit.
        return {"vmem_limit": 48 * 1024 * 1024, "tm": 256, "tn": 512, "tff": 1024}
    # v5e / v6e: 128 MiB VMEM -> larger tiles amortize per-step overhead.
    return {"vmem_limit": 96 * 1024 * 1024, "tm": 512, "tn": 1024, "tff": 2048}


_CFG = _tpu_config()


def _cparams(semantics):
    return pltpu.CompilerParams(dimension_semantics=semantics,
                                vmem_limit_bytes=_CFG["vmem_limit"])


def _pick_row_tile(m, target=None):
    """Row (second-minor) tile: multiple of 8 dividing m, or full m."""
    target = _CFG["tm"] if target is None else target
    if m <= target:
        return m
    t = target - (target % 8)
    while t >= 8:
        if m % t == 0:
            return t
        t -= 8
    return m


def _pick_col_tile(n, target=None):
    """Lane (minor) tile: multiple of 128 dividing n, or full n."""
    target = _CFG["tn"] if target is None else target
    if n <= target:
        return n
    t = target - (target % 128)
    while t >= 128:
        if n % t == 0:
            return t
        t -= 128
    return n


# ----------------------------------------------------------------------------
# Kernel: fused RMSNorm + Linear  (y = rmsnorm(x) @ W^T, W native (d_out,d_in))
#   Norm computed ONCE per row tile into a bf16 VMEM scratch (j axis arbitrary).
# ----------------------------------------------------------------------------

def _norm_linear_kernel(x_ref, g_ref, w_ref, o_ref, xn_ref):
    @pl.when(pl.program_id(1) == 0)
    def _():
        x = x_ref[...]                                        # (tm, d_in) f32
        ms = jnp.mean(x * x, axis=-1, keepdims=True)
        xn_ref[...] = (x * lax.rsqrt(ms + _EPS) * g_ref[...]).astype(jnp.bfloat16)
    o_ref[...] = lax.dot_general(
        xn_ref[...], w_ref[...],
        dimension_numbers=(((1,), (1,)), ((), ())),           # contract d_in
        preferred_element_type=jnp.float32).astype(o_ref.dtype)


def fused_rmsnorm_linear(x, gain, weight, out_dtype=jnp.bfloat16):
    """y = Linear(RMSNorm(x)); weight bf16 (d_out, d_in), gain f32 (d_in,)."""
    d_out, d_in = weight.shape
    lead = x.shape[:-1]
    x2d = x.reshape(-1, d_in)
    m = x2d.shape[0]
    tm = _pick_row_tile(m)
    tn = _pick_col_tile(d_out)
    grid = (m // tm, d_out // tn)
    y = pl.pallas_call(
        _norm_linear_kernel,
        out_shape=jax.ShapeDtypeStruct((m, d_out), out_dtype),
        grid=grid,
        in_specs=[pl.BlockSpec((tm, d_in), lambda i, j: (i, 0)),
                  pl.BlockSpec((1, d_in), lambda i, j: (0, 0)),
                  # TODO(synk): pipeline_mode=pl.Buffered(3) on the weight if
                  # profiling shows exposed weight DMA on v6e.
                  pl.BlockSpec((tn, d_in), lambda i, j: (j, 0))],
        out_specs=pl.BlockSpec((tm, tn), lambda i, j: (i, j)),
        scratch_shapes=[pltpu.VMEM((tm, d_in), jnp.bfloat16)],
        compiler_params=_cparams(("parallel", "arbitrary")),
    )(x2d, gain.reshape(1, d_in), weight)
    return y.reshape(*lead, d_out)


# ----------------------------------------------------------------------------
# Kernel: Linear + residual add  (y = residual + x @ W^T)
# ----------------------------------------------------------------------------

def _linear_residual_kernel(x_ref, w_ref, r_ref, o_ref):
    x = x_ref[...]
    if x.dtype != jnp.bfloat16:
        x = x.astype(jnp.bfloat16)
    y = lax.dot_general(x, w_ref[...],
                        dimension_numbers=(((1,), (1,)), ((), ())),
                        preferred_element_type=jnp.float32)
    o_ref[...] = r_ref[...] + y


def fused_linear_residual(x, weight, residual):
    d_out, d_in = weight.shape
    lead = x.shape[:-1]
    x2d = x.reshape(-1, d_in)
    r2d = residual.reshape(-1, d_out)
    m = x2d.shape[0]
    tm = _pick_row_tile(m)
    tn = _pick_col_tile(d_out)
    grid = (m // tm, d_out // tn)
    y = pl.pallas_call(
        _linear_residual_kernel,
        out_shape=jax.ShapeDtypeStruct((m, d_out), jnp.float32),
        grid=grid,
        in_specs=[pl.BlockSpec((tm, d_in), lambda i, j: (i, 0)),
                  pl.BlockSpec((tn, d_in), lambda i, j: (j, 0)),
                  pl.BlockSpec((tm, tn), lambda i, j: (i, j))],
        out_specs=pl.BlockSpec((tm, tn), lambda i, j: (i, j)),
        compiler_params=_cparams(("parallel", "parallel")),
    )(x2d, weight, r2d)
    return y.reshape(*lead, d_out)


# ----------------------------------------------------------------------------
# Kernel: fused RMSNorm + SwiGLU FFN + residual with d_ff tiled reduction
#   y = x + w2( silu(w1 n) * w3 n ),  n = rmsnorm(x)
# ----------------------------------------------------------------------------

def _norm_ffn_residual_kernel(x_ref, g_ref, w1_ref, w3_ref, w2_ref, o_ref,
                              xn_ref, acc_ref):
    k = pl.program_id(1)

    @pl.when(k == 0)
    def _():
        x = x_ref[...]                                        # (tm, d_model) f32
        ms = jnp.mean(x * x, axis=-1, keepdims=True)
        xn_ref[...] = (x * lax.rsqrt(ms + _EPS) * g_ref[...]).astype(jnp.bfloat16)
        acc_ref[...] = jnp.zeros_like(acc_ref)

    dn = (((1,), (1,)), ((), ()))
    xn = xn_ref[...]                                          # (tm, d_model) bf16
    h1 = lax.dot_general(xn, w1_ref[...], dn, preferred_element_type=jnp.float32)
    h3 = lax.dot_general(xn, w3_ref[...], dn, preferred_element_type=jnp.float32)
    gact = (h1 * jax.nn.sigmoid(h1)) * h3                     # silu*gate, f32, (tm,tff)
    acc_ref[...] += lax.dot_general(gact.astype(jnp.bfloat16), w2_ref[...], dn,
                                    preferred_element_type=jnp.float32)

    @pl.when(k == pl.num_programs(1) - 1)
    def _():
        o_ref[...] = x_ref[...] + acc_ref[...]                # fused residual


def fused_rmsnorm_ffn_residual(x, gain, w1, w3, w2):
    d_ff, d_model = w1.shape
    lead = x.shape[:-1]
    x2d = x.reshape(-1, d_model)
    m = x2d.shape[0]
    tm = _pick_row_tile(m)
    tff = _pick_col_tile(d_ff, _CFG["tff"])
    grid = (m // tm, d_ff // tff)
    y = pl.pallas_call(
        _norm_ffn_residual_kernel,
        out_shape=jax.ShapeDtypeStruct((m, d_model), jnp.float32),
        grid=grid,
        in_specs=[pl.BlockSpec((tm, d_model), lambda i, k: (i, 0)),
                  pl.BlockSpec((1, d_model), lambda i, k: (0, 0)),
                  pl.BlockSpec((tff, d_model), lambda i, k: (k, 0)),
                  pl.BlockSpec((tff, d_model), lambda i, k: (k, 0)),
                  pl.BlockSpec((d_model, tff), lambda i, k: (0, k))],
        out_specs=pl.BlockSpec((tm, d_model), lambda i, k: (i, 0)),
        scratch_shapes=[pltpu.VMEM((tm, d_model), jnp.bfloat16),
                        pltpu.VMEM((tm, d_model), jnp.float32)],
        compiler_params=_cparams(("parallel", "arbitrary")),
    )(x2d, gain.reshape(1, d_model), w1, w3, w2)
    return y.reshape(*lead, d_model)


# ----------------------------------------------------------------------------
# Kernel: causal multi-head attention on the fused QKV slab (bf16 in, bf16 out)
#   input  qkv: (B, S, 3*d_model) bf16, layout [q | k | v], heads contiguous
#   output o  : (B, S, d_model) bf16 already in merged-heads layout
# ----------------------------------------------------------------------------

def _causal_attention_kernel(qkv_ref, o_ref, o_scratch, *, num_heads, d_head,
                             d_model):
    qkv = qkv_ref[0]                                          # (S, 3*d_model) bf16
    S = qkv.shape[0]
    scale = 1.0 / math.sqrt(d_head)
    row = lax.broadcasted_iota(jnp.int32, (S, S), 0)
    col = lax.broadcasted_iota(jnp.int32, (S, S), 1)
    causal = col <= row
    # hoist the 1/sqrt(d_head) scale out of the head loop (applied in f32)
    q_all = (qkv[:, :d_model].astype(jnp.float32) * scale).astype(jnp.bfloat16)
    k_all = qkv[:, d_model:2 * d_model]
    v_all = qkv[:, 2 * d_model:3 * d_model]
    for h in range(num_heads):
        q = q_all[:, h * d_head:(h + 1) * d_head]
        k = k_all[:, h * d_head:(h + 1) * d_head]
        v = v_all[:, h * d_head:(h + 1) * d_head]
        s = lax.dot_general(q, k,
                            dimension_numbers=(((1,), (1,)), ((), ())),
                            preferred_element_type=jnp.float32)
        s = jnp.where(causal, s, -jnp.inf)
        m = jnp.max(s, axis=-1, keepdims=True)
        p = jnp.exp(s - m)
        l = jnp.sum(p, axis=-1, keepdims=True)                # f32 (S,1)
        o_h = jnp.dot(p.astype(jnp.bfloat16), v,
                      preferred_element_type=jnp.float32)
        o_h = o_h * (1.0 / l)                                 # exact softmax norm
        o_scratch[:, h * d_head:(h + 1) * d_head] = o_h.astype(jnp.bfloat16)
    o_ref[0] = o_scratch[...]                                 # one lane-dense store


def pallas_causal_attention(qkv, num_heads, d_model):
    # TODO(synk): switch to a flash-style tiled kernel (q-row tiling, online
    # softmax, causal block skipping) for long sequences; full SxS per batch is
    # fine at these shapes.
    B, S, three_d = qkv.shape
    d_head = d_model // num_heads
    kernel = functools.partial(_causal_attention_kernel,
                               num_heads=num_heads, d_head=d_head,
                               d_model=d_model)
    return pl.pallas_call(
        kernel,
        out_shape=jax.ShapeDtypeStruct((B, S, d_model), jnp.bfloat16),
        grid=(B,),
        in_specs=[pl.BlockSpec((1, S, three_d), lambda b: (b, 0, 0))],
        out_specs=pl.BlockSpec((1, S, d_model), lambda b: (b, 0, 0)),
        scratch_shapes=[pltpu.VMEM((S, d_model), jnp.bfloat16)],
        compiler_params=_cparams(("parallel",)),
    )(qkv)


# ----------------------------------------------------------------------------
# Final-norm + lm_head path: norm once, then weight-stationary linear so the
# (vocab, d_model) weight is streamed from HBM exactly once.
# ----------------------------------------------------------------------------

def _rmsnorm_cast_kernel(x_ref, g_ref, o_ref):
    x = x_ref[...]
    ms = jnp.mean(x * x, axis=-1, keepdims=True)
    o_ref[...] = (x * lax.rsqrt(ms + _EPS) * g_ref[...]).astype(o_ref.dtype)


def rmsnorm_bf16(x, gain):
    d = x.shape[-1]
    lead = x.shape[:-1]
    x2d = x.reshape(-1, d)
    m = x2d.shape[0]
    tm = _pick_row_tile(m)
    y = pl.pallas_call(
        _rmsnorm_cast_kernel,
        out_shape=jax.ShapeDtypeStruct((m, d), jnp.bfloat16),
        grid=(m // tm,),
        in_specs=[pl.BlockSpec((tm, d), lambda i: (i, 0)),
                  pl.BlockSpec((1, d), lambda i: (0, 0))],
        out_specs=pl.BlockSpec((tm, d), lambda i: (i, 0)),
        compiler_params=_cparams(("parallel",)),
    )(x2d, gain.reshape(1, d))
    return y.reshape(*lead, d)


def _linear_kernel(x_ref, w_ref, o_ref):
    x = x_ref[...]
    if x.dtype != jnp.bfloat16:
        x = x.astype(jnp.bfloat16)
    o_ref[...] = lax.dot_general(
        x, w_ref[...],
        dimension_numbers=(((1,), (1,)), ((), ())),
        preferred_element_type=jnp.float32)


def linear_weight_stationary(x, weight):
    """y = x @ W^T with the d_out (vocab) axis OUTER: each weight tile DMA'd once."""
    d_out, d_in = weight.shape
    lead = x.shape[:-1]
    x2d = x.reshape(-1, d_in)
    m = x2d.shape[0]
    tm = _pick_row_tile(m)
    tn = _pick_col_tile(d_out)
    grid = (d_out // tn, m // tm)          # j (weight tile) outer, i (rows) inner
    y = pl.pallas_call(
        _linear_kernel,
        out_shape=jax.ShapeDtypeStruct((m, d_out), jnp.float32),
        grid=grid,
        in_specs=[pl.BlockSpec((tm, d_in), lambda j, i: (i, 0)),
                  pl.BlockSpec((tn, d_in), lambda j, i: (j, 0))],
        out_specs=pl.BlockSpec((tm, tn), lambda j, i: (i, j)),
        compiler_params=_cparams(("parallel", "parallel")),
    )(x2d, weight)
    return y.reshape(*lead, d_out)


# ----------------------------------------------------------------------------
# Parameter init (deterministic, mirrors the PyTorch __init__)
# ----------------------------------------------------------------------------

def trunc_normal(key, shape, std):
    # trunc_normal_(std=std, a=-3*std, b=3*std)
    return std * jax.random.truncated_normal(key, -3.0, 3.0, shape, jnp.float32)


def init_params(key, vocab_size, d_model, num_layers, d_ff):
    params = {}
    key, k_emb = jax.random.split(key)
    params["emb"] = trunc_normal(k_emb, (vocab_size, d_model), 1.0)

    lin_std = lambda d_in, d_out: math.sqrt(2.0 / (d_in + d_out))
    layers = []
    for _ in range(num_layers):
        key, kq, kk, kv, ko, k1, k2, k3 = jax.random.split(key, 8)
        std_attn = lin_std(d_model, d_model)
        wq = trunc_normal(kq, (d_model, d_model), std_attn)
        wk = trunc_normal(kk, (d_model, d_model), std_attn)
        wv = trunc_normal(kv, (d_model, d_model), std_attn)
        layers.append({
            # fused QKV weight, native (d_out, d_in) layout, bf16 for the MXU
            "wqkv": jnp.concatenate([wq, wk, wv], axis=0).astype(jnp.bfloat16),
            "wo": trunc_normal(ko, (d_model, d_model), std_attn).astype(jnp.bfloat16),
            "w1": trunc_normal(k1, (d_ff, d_model),
                               lin_std(d_model, d_ff)).astype(jnp.bfloat16),
            "w3": trunc_normal(k3, (d_ff, d_model),
                               lin_std(d_model, d_ff)).astype(jnp.bfloat16),
            "w2": trunc_normal(k2, (d_model, d_ff),
                               lin_std(d_ff, d_model)).astype(jnp.bfloat16),
            "ln1": jnp.ones((d_model,), jnp.float32),
            "ln2": jnp.ones((d_model,), jnp.float32),
        })
    params["layers"] = layers
    params["ln_final"] = jnp.ones((d_model,), jnp.float32)

    key, k_head = jax.random.split(key)
    lm_head = trunc_normal(k_head, (vocab_size, d_model),
                           lin_std(d_model, vocab_size)).astype(jnp.bfloat16)
    # pad vocab to a multiple of 128 so lm_head tiles stay lane-dense
    vocab_padded = ((vocab_size + 127) // 128) * 128
    if vocab_padded != vocab_size:
        lm_head = jnp.pad(lm_head, ((0, vocab_padded - vocab_size), (0, 0)))
    params["lm_head"] = lm_head
    return params


# ----------------------------------------------------------------------------
# Forward pass (glue in plain JAX, hot paths in fused Pallas kernels)
# ----------------------------------------------------------------------------

def transformer_lm_forward(params, token_ids, num_heads, vocab_size):
    B, S = token_ids.shape
    emb = params["emb"]
    d_model = emb.shape[1]
    assert d_model % num_heads == 0

    # Embedding lookup (gather) kept as glue.
    h = jnp.take(emb, token_ids, axis=0).astype(jnp.float32)  # (B, S, d_model) f32

    for lyr in params["layers"]:
        # --- attention sublayer: rmsnorm+QKV fused, attn, out-proj+residual fused
        qkv = fused_rmsnorm_linear(h, lyr["ln1"], lyr["wqkv"])     # bf16 (B,S,3d)
        attn_o = pallas_causal_attention(qkv, num_heads, d_model)   # bf16 (B,S,d)
        h = fused_linear_residual(attn_o, lyr["wo"], h)             # f32 residual

        # --- FFN sublayer: rmsnorm + SwiGLU (d_ff tiled) + residual in one kernel
        h = fused_rmsnorm_ffn_residual(h, lyr["ln2"], lyr["w1"],
                                       lyr["w3"], lyr["w2"])

    # final norm (once), then weight-stationary lm_head projection
    hn = rmsnorm_bf16(h, params["ln_final"])
    logits = linear_weight_stationary(hn, params["lm_head"])
    return logits[..., :vocab_size]                             # drop vocab padding


# ----------------------------------------------------------------------------
# Main
# ----------------------------------------------------------------------------

if __name__ == "__main__":
    # Small, shape-consistent config.
    vocab_size = 64
    context_length = 16
    d_model = 32
    num_layers = 2
    num_heads = 2
    d_ff = 64
    rope_theta = 10000.0  # unused: provided forward never applies RoPE

    batch = 2
    seq = 8

    root = jax.random.PRNGKey(0)
    k_param, k_tok = jax.random.split(root)
    params = init_params(k_param, vocab_size, d_model, num_layers, d_ff)
    tokens = jax.random.randint(k_tok, (batch, seq), 0, vocab_size, jnp.int32)

    fwd = jax.jit(functools.partial(transformer_lm_forward,
                                    num_heads=num_heads, vocab_size=vocab_size))
    logits = fwd(params, tokens)
    jax.block_until_ready(logits)

    assert logits.shape == (batch, seq, vocab_size)
    assert logits.dtype == jnp.float32
    assert bool(jnp.all(jnp.isfinite(logits)))
    print("KERNEL_OK")
</pallas_src>

<mosaic_0001>
module attributes {stable_mosaic.version = 11 : i64} {
  func.func @_linear_residual_kernel(%arg0: i32, %arg1: i32, %arg2: memref<16x32xbf16, #tpu.memory_space<vmem>>, %arg3: memref<32x32xbf16, #tpu.memory_space<vmem>>, %arg4: memref<16x32xf32, #tpu.memory_space<vmem>>, %arg5: memref<16x32xf32, #tpu.memory_space<vmem>>) attributes {dimension_semantics = [#tpu.dimension_semantics<parallel>, #tpu.dimension_semantics<parallel>], iteration_bounds = array<i64: 1, 1>, scalar_prefetch = 0 : i64, scratch_operands = 0 : i64, tpu.core_type = #tpu.core_type<tc>, window_params = [{transform_indices = @transform_0, window_bounds = array<i64: 16, 32>}, {transform_indices = @transform_1, window_bounds = array<i64: 32, 32>}, {transform_indices = @transform_2, window_bounds = array<i64: 16, 32>}, {transform_indices = @transform_3, window_bounds = array<i64: 16, 32>}]} {
    %c0 = arith.constant 0 : index
    %c0_0 = arith.constant 0 : index
    %0 = vector.load %arg2[%c0, %c0_0] : memref<16x32xbf16, #tpu.memory_space<vmem>>, vector<16x32xbf16>
    %c0_1 = arith.constant 0 : index
    %c0_2 = arith.constant 0 : index
    %1 = vector.load %arg3[%c0_1, %c0_2] : memref<32x32xbf16, #tpu.memory_space<vmem>>, vector<32x32xbf16>
    %cst = arith.constant dense<0.000000e+00> : vector<16x32xf32>
    %2 = tpu.matmul %0, %1, %cst {dimension_numbers = #tpu.dot_dimension_numbers<[1], [1], [0], [0], [0, 0, 1, 0], [], []>} : vector<16x32xbf16>, vector<32x32xbf16>, vector<16x32xf32> -> vector<16x32xf32>
    %c0_3 = arith.constant 0 : index
    %c0_4 = arith.constant 0 : index
    %3 = vector.load %arg4[%c0_3, %c0_4] : memref<16x32xf32, #tpu.memory_space<vmem>>, vector<16x32xf32>
    %4 = arith.addf %3, %2 : vector<16x32xf32>
    %c0_5 = arith.constant 0 : index
    %c0_6 = arith.constant 0 : index
    %5 = vector.load %arg5[%c0_5, %c0_6] : memref<16x32xf32, #tpu.memory_space<vmem>>, vector<16x32xf32>
    tpu.vector_store %arg5[%c0_5, %c0_6], %4 {strides = array<i32>} : memref<16x32xf32, #tpu.memory_space<vmem>>, vector<16x32xf32>,
    return
  }
  func.func @transform_0(%arg0: i32, %arg1: i32) -> (i32, i32) {
    %c0_i32 = arith.constant 0 : i32
    %c0_i32_0 = arith.constant 0 : i32
    return %arg0, %c0_i32 : i32, i32
  }
  func.func @transform_1(%arg0: i32, %arg1: i32) -> (i32, i32) {
    %c0_i32 = arith.constant 0 : i32
    %c0_i32_0 = arith.constant 0 : i32
    return %arg1, %c0_i32 : i32, i32
  }
  func.func @transform_2(%arg0: i32, %arg1: i32) -> (i32, i32) {
    %c0_i32 = arith.constant 0 : i32
    return %arg0, %arg1 : i32, i32
  }
  func.func @transform_3(%arg0: i32, %arg1: i32) -> (i32, i32) {
    %c0_i32 = arith.constant 0 : i32
    return %arg0, %arg1 : i32, i32
  }
}

module attributes {stable_mosaic.version = 11 : i64} {
  func.func @_norm_linear_kernel(%arg0: i32, %arg1: i32, %arg2: memref<16x32xf32, #tpu.memory_space<vmem>>, %arg3: memref<1x32xf32, #tpu.memory_space<vmem>>, %arg4: memref<96x32xbf16, #tpu.memory_space<vmem>>, %arg5: memref<16x96xbf16, #tpu.memory_space<vmem>>, %arg6: memref<16x32xbf16, #tpu.memory_space<vmem>>) attributes {dimension_semantics = [#tpu.dimension_semantics<parallel>, #tpu.dimension_semantics<arbitrary>], iteration_bounds = array<i64: 1, 1>, scalar_prefetch = 0 : i64, scratch_operands = 1 : i64, tpu.core_type = #tpu.core_type<tc>, window_params = [{transform_indices = @transform_0, window_bounds = array<i64: 16, 32>}, {pipeline_mode = #tpu.pipeline_mode<synchronous>, transform_indices = @transform_1, window_bounds = array<i64: 1, 32>}, {transform_indices = @transform_2, window_bounds = array<i64: 96, 32>}, {transform_indices = @transform_3, window_bounds = array<i64: 16, 96>}]} {
    %c0_i32 = arith.constant 0 : i32
    %0 = arith.cmpi eq, %arg1, %c0_i32 : i32
    %1 = arith.extui %0 : i1 to i32
    %c0_i32_0 = arith.constant 0 : i32
    %2 = arith.cmpi ne, %1, %c0_i32_0 : i32
    scf.if %2 {
      %c0_6 = arith.constant 0 : index
      %c0_7 = arith.constant 0 : index
      %8 = vector.load %arg2[%c0_6, %c0_7] : memref<16x32xf32, #tpu.memory_space<vmem>>, vector<16x32xf32>
      %9 = arith.mulf %8, %8 : vector<16x32xf32>
      %cst_8 = arith.constant dense<0.000000e+00> : vector<16xf32>
      %10 = vector.multi_reduction <add>, %9, %cst_8 [1] : vector<16x32xf32> to vector<16xf32>
      %11 = vector.shape_cast %10 : vector<16xf32> to vector<16x1xf32>
      %cst_9 = arith.constant 3.200000e+01 : f32
      %12 = vector.broadcast %cst_9 : f32 to vector<16x1xf32>
      %13 = arith.divf %11, %12 : vector<16x1xf32>
      %cst_10 = arith.constant 9.99999974E-6 : f32
      %14 = vector.broadcast %cst_10 : f32 to vector<16x1xf32>
      %15 = arith.addf %13, %14 : vector<16x1xf32>
      %16 = math.rsqrt %15 : vector<16x1xf32>
      %17 = vector.broadcast %16 : vector<16x1xf32> to vector<16x32xf32>
      %18 = arith.mulf %8, %17 : vector<16x32xf32>
      %c0_11 = arith.constant 0 : index
      %c0_12 = arith.constant 0 : index
      %19 = vector.load %arg3[%c0_11, %c0_12] : memref<1x32xf32, #tpu.memory_space<vmem>>, vector<1x32xf32>
      %20 = vector.broadcast %19 : vector<1x32xf32> to vector<16x32xf32>
      %21 = arith.mulf %18, %20 : vector<16x32xf32>
      %22 = arith.truncf %21 : vector<16x32xf32> to vector<16x32xbf16>
      %c0_13 = arith.constant 0 : index
      %c0_14 = arith.constant 0 : index
      %23 = vector.load %arg6[%c0_13, %c0_14] : memref<16x32xbf16, #tpu.memory_space<vmem>>, vector<16x32xbf16>
      tpu.vector_store %arg6[%c0_13, %c0_14], %22 {strides = array<i32>} : memref<16x32xbf16, #tpu.memory_space<vmem>>, vector<16x32xbf16>,
    } else {
    }
    %c0 = arith.constant 0 : index
    %c0_1 = arith.constant 0 : index
    %3 = vector.load %arg6[%c0, %c0_1] : memref<16x32xbf16, #tpu.memory_space<vmem>>, vector<16x32xbf16>
    %c0_2 = arith.constant 0 : index
    %c0_3 = arith.constant 0 : index
    %4 = vector.load %arg4[%c0_2, %c0_3] : memref<96x32xbf16, #tpu.memory_space<vmem>>, vector<96x32xbf16>
    %cst = arith.constant dense<0.000000e+00> : vector<16x96xf32>
    %5 = tpu.matmul %3, %4, %cst {dimension_numbers = #tpu.dot_dimension_numbers<[1], [1], [0], [0], [0, 0, 1, 0], [], []>} : vector<16x32xbf16>, vector<96x32xbf16>, vector<16x96xf32> -> vector<16x96xf32>
    %6 = arith.truncf %5 : vector<16x96xf32> to vector<16x96xbf16>
    %c0_4 = arith.constant 0 : index
    %c0_5 = arith.constant 0 : index
    %7 = vector.load %arg5[%c0_4, %c0_5] : memref<16x96xbf16, #tpu.memory_space<vmem>>, vector<16x96xbf16>
    tpu.vector_store %arg5[%c0_4, %c0_5], %6 {strides = array<i32>} : memref<16x96xbf16, #tpu.memory_space<vmem>>, vector<16x96xbf16>,
    return
  }
  func.func @transform_0(%arg0: i32, %arg1: i32) -> (i32, i32) {
    %c0_i32 = arith.constant 0 : i32
    %c0_i32_0 = arith.constant 0 : i32
    return %arg0, %c0_i32 : i32, i32
  }
  func.func @transform_1(%arg0: i32, %arg1: i32) -> (i32, i32) {
    %c0_i32 = arith.constant 0 : i32
    %c0_i32_0 = arith.constant 0 : i32
    %c0_i32_1 = arith.constant 0 : i32
    return %c0_i32, %c0_i32_0 : i32, i32
  }
  func.func @transform_2(%arg0: i32, %arg1: i32) -> (i32, i32) {
    %c0_i32 = arith.constant 0 : i32
    %c0_i32_0 = arith.constant 0 : i32
    return %arg1, %c0_i32 : i32, i32
  }
  func.func @transform_3(%arg0: i32, %arg1: i32) -> (i32, i32) {
    %c0_i32 = arith.constant 0 : i32
    return %arg0, %arg1 : i32, i32
  }
}

module attributes {stable_mosaic.version = 11 : i64} {
  func.func @_causal_attention_kernel(%arg0: i32, %arg1: memref<1x8x96xbf16, #tpu.memory_space<vmem>>, %arg2: memref<1x8x32xbf16, #tpu.memory_space<vmem>>, %arg3: memref<8x32xbf16, #tpu.memory_space<vmem>>) attributes {dimension_semantics = [#tpu.dimension_semantics<parallel>], iteration_bounds = array<i64: 2>, scalar_prefetch = 0 : i64, scratch_operands = 1 : i64, tpu.core_type = #tpu.core_type<tc>, window_params = [{transform_indices = @transform_0, window_bounds = array<i64: 1, 8, 96>}, {transform_indices = @transform_1, window_bounds = array<i64: 1, 8, 32>}]} {
    %c0 = arith.constant 0 : index
    %c0_0 = arith.constant 0 : index
    %c0_1 = arith.constant 0 : index
    %0 = vector.load %arg1[%c0, %c0_0, %c0_1] : memref<1x8x96xbf16, #tpu.memory_space<vmem>>, vector<1x8x96xbf16>
    %1 = vector.shape_cast %0 : vector<1x8x96xbf16> to vector<8x96xbf16>
    %2 = tpu.iota {dimensions = array<i32: 0>} : vector<8x8xi32>
    %3 = tpu.iota {dimensions = array<i32: 1>} : vector<8x8xi32>
    %4 = arith.cmpi sle, %3, %2 : vector<8x8xi32>
    %5 = vector.extract_strided_slice %1 {offsets = [0, 0], sizes = [8, 32], strides = [1, 1]} : vector<8x96xbf16> to vector<8x32xbf16>
    %6 = arith.extf %5 : vector<8x32xbf16> to vector<8x32xf32>
    %cst = arith.constant 2.500000e-01 : f32
    %7 = vector.broadcast %cst : f32 to vector<8x32xf32>
    %8 = arith.mulf %6, %7 : vector<8x32xf32>
    %9 = arith.truncf %8 : vector<8x32xf32> to vector<8x32xbf16>
    %10 = vector.extract_strided_slice %1 {offsets = [0, 32], sizes = [8, 32], strides = [1, 1]} : vector<8x96xbf16> to vector<8x32xbf16>
    %11 = vector.extract_strided_slice %1 {offsets = [0, 64], sizes = [8, 32], strides = [1, 1]} : vector<8x96xbf16> to vector<8x32xbf16>
    %12 = vector.extract_strided_slice %9 {offsets = [0, 0], sizes = [8, 16], strides = [1, 1]} : vector<8x32xbf16> to vector<8x16xbf16>
    %13 = vector.extract_strided_slice %10 {offsets = [0, 0], sizes = [8, 16], strides = [1, 1]} : vector<8x32xbf16> to vector<8x16xbf16>
    %14 = vector.extract_strided_slice %11 {offsets = [0, 0], sizes = [8, 16], strides = [1, 1]} : vector<8x32xbf16> to vector<8x16xbf16>
    %cst_2 = arith.constant dense<0.000000e+00> : vector<8x8xf32>
    %15 = tpu.matmul %12, %13, %cst_2 {dimension_numbers = #tpu.dot_dimension_numbers<[1], [1], [0], [0], [0, 0, 1, 0], [], []>} : vector<8x16xbf16>, vector<8x16xbf16>, vector<8x8xf32> -> vector<8x8xf32>
    %cst_3 = arith.constant 0xFF800000 : f32
    %16 = vector.broadcast %cst_3 : f32 to vector<8x8xf32>
    %17 = arith.select %4, %15, %16 : vector<8x8xi1>, vector<8x8xf32>
    %cst_4 = arith.constant dense<0xFF800000> : vector<8xf32>
    %18 = vector.multi_reduction <maximumf>, %17, %cst_4 [1] : vector<8x8xf32> to vector<8xf32>
    %19 = vector.shape_cast %18 : vector<8xf32> to vector<8x1xf32>
    %20 = vector.broadcast %19 : vector<8x1xf32> to vector<8x8xf32>
    %21 = arith.subf %17, %20 : vector<8x8xf32>
    %22 = math.exp %21 : vector<8x8xf32>
    %cst_5 = arith.constant dense<0.000000e+00> : vector<8xf32>
    %23 = vector.multi_reduction <add>, %22, %cst_5 [1] : vector<8x8xf32> to vector<8xf32>
    %24 = vector.shape_cast %23 : vector<8xf32> to vector<8x1xf32>
    %25 = arith.truncf %22 : vector<8x8xf32> to vector<8x8xbf16>
    %cst_6 = arith.constant dense<0.000000e+00> : vector<8x16xf32>
    %26 = tpu.matmul %25, %14, %cst_6 {dimension_numbers = #tpu.dot_dimension_numbers<[1], [0], [0], [1], [0, 0, 1, 1], [], []>} : vector<8x8xbf16>, vector<8x16xbf16>, vector<8x16xf32> -> vector<8x16xf32>
    %cst_7 = arith.constant 1.000000e+00 : f32
    %27 = vector.broadcast %cst_7 : f32 to vector<8x1xf32>
    %28 = arith.divf %27, %24 : vector<8x1xf32>
    %29 = vector.broadcast %28 : vector<8x1xf32> to vector<8x16xf32>
    %30 = arith.mulf %26, %29 : vector<8x16xf32>
    %31 = arith.truncf %30 : vector<8x16xf32> to vector<8x16xbf16>
    %c0_8 = arith.constant 0 : index
    %c0_9 = arith.constant 0 : index
    %32 = vector.load %arg3[%c0_8, %c0_9] : memref<8x32xbf16, #tpu.memory_space<vmem>>, vector<8x16xbf16>
    tpu.vector_store %arg3[%c0_8, %c0_9], %31 {strides = array<i32>} : memref<8x32xbf16, #tpu.memory_space<vmem>>, vector<8x16xbf16>,
    %33 = vector.extract_strided_slice %9 {offsets = [0, 16], sizes = [8, 16], strides = [1, 1]} : vector<8x32xbf16> to vector<8x16xbf16>
    %34 = vector.extract_strided_slice %10 {offsets = [0, 16], sizes = [8, 16], strides = [1, 1]} : vector<8x32xbf16> to vector<8x16xbf16>
    %35 = vector.extract_strided_slice %11 {offsets = [0, 16], sizes = [8, 16], strides = [1, 1]} : vector<8x32xbf16> to vector<8x16xbf16>
    %cst_10 = arith.constant dense<0.000000e+00> : vector<8x8xf32>
    %36 = tpu.matmul %33, %34, %cst_10 {dimension_numbers = #tpu.dot_dimension_numbers<[1], [1], [0], [0], [0, 0, 1, 0], [], []>} : vector<8x16xbf16>, vector<8x16xbf16>, vector<8x8xf32> -> vector<8x8xf32>
    %cst_11 = arith.constant 0xFF800000 : f32
    %37 = vector.broadcast %cst_11 : f32 to vector<8x8xf32>
    %38 = arith.select %4, %36, %37 : vector<8x8xi1>, vector<8x8xf32>
    %cst_12 = arith.constant dense<0xFF800000> : vector<8xf32>
    %39 = vector.multi_reduction <maximumf>, %38, %cst_12 [1] : vector<8x8xf32> to vector<8xf32>
    %40 = vector.shape_cast %39 : vector<8xf32> to vector<8x1xf32>
    %41 = vector.broadcast %40 : vector<8x1xf32> to vector<8x8xf32>
    %42 = arith.subf %38, %41 : vector<8x8xf32>
    %43 = math.exp %42 : vector<8x8xf32>
    %cst_13 = arith.constant dense<0.000000e+00> : vector<8xf32>
    %44 = vector.multi_reduction <add>, %43, %cst_13 [1] : vector<8x8xf32> to vector<8xf32>
    %45 = vector.shape_cast %44 : vector<8xf32> to vector<8x1xf32>
    %46 = arith.truncf %43 : vector<8x8xf32> to vector<8x8xbf16>
    %cst_14 = arith.constant dense<0.000000e+00> : vector<8x16xf32>
    %47 = tpu.matmul %46, %35, %cst_14 {dimension_numbers = #tpu.dot_dimension_numbers<[1], [0], [0], [1], [0, 0, 1, 1], [], []>} : vector<8x8xbf16>, vector<8x16xbf16>, vector<8x16xf32> -> vector<8x16xf32>
    %cst_15 = arith.constant 1.000000e+00 : f32
    %48 = vector.broadcast %cst_15 : f32 to vector<8x1xf32>
    %49 = arith.divf %48, %45 : vector<8x1xf32>
    %50 = vector.broadcast %49 : vector<8x1xf32> to vector<8x16xf32>
    %51 = arith.mulf %47, %50 : vector<8x16xf32>
    %52 = arith.truncf %51 : vector<8x16xf32> to vector<8x16xbf16>
    %c0_16 = arith.constant 0 : index
    %c16 = arith.constant 16 : index
    %53 = vector.load %arg3[%c0_16, %c16] : memref<8x32xbf16, #tpu.memory_space<vmem>>, vector<8x16xbf16>
    tpu.vector_store %arg3[%c0_16, %c16], %52 {strides = array<i32>} : memref<8x32xbf16, #tpu.memory_space<vmem>>, vector<8x16xbf16>,
    %c0_17 = arith.constant 0 : index
    %c0_18 = arith.constant 0 : index
    %54 = vector.load %arg3[%c0_17, %c0_18] : memref<8x32xbf16, #tpu.memory_space<vmem>>, vector<8x32xbf16>
    %c0_19 = arith.constant 0 : index
    %c0_20 = arith.constant 0 : index
    %c0_21 = arith.constant 0 : index
    %55 = vector.load %arg2[%c0_19, %c0_20, %c0_21] : memref<1x8x32xbf16, #tpu.memory_space<vmem>>, vector<1x8x32xbf16>
    %56 = vector.shape_cast %55 : vector<1x8x32xbf16> to vector<8x32xbf16>
    %57 = vector.shape_cast %54 : vector<8x32xbf16> to vector<1x8x32xbf16>
    tpu.vector_store %arg2[%c0_19, %c0_20, %c0_21], %57 {strides = array<i32>} : memref<1x8x32xbf16, #tpu.memory_space<vmem>>, vector<1x8x32xbf16>,
    return
  }
  func.func @transform_0(%arg0: i32) -> (i32, i32, i32) {
    %c0_i32 = arith.constant 0 : i32
    %c0_i32_0 = arith.constant 0 : i32
    %c0_i32_1 = arith.constant 0 : i32
    return %arg0, %c0_i32, %c0_i32_0 : i32, i32, i32
  }
  func.func @transform_1(%arg0: i32) -> (i32, i32, i32) {
    %c0_i32 = arith.constant 0 : i32
    %c0_i32_0 = arith.constant 0 : i32
    %c0_i32_1 = arith.constant 0 : i32
    return %arg0, %c0_i32, %c0_i32_0 : i32, i32, i32
  }
}

module attributes {stable_mosaic.version = 11 : i64} {
  func.func @_norm_ffn_residual_kernel(%arg0: i32, %arg1: i32, %arg2: memref<16x32xf32, #tpu.memory_space<vmem>>, %arg3: memref<1x32xf32, #tpu.memory_space<vmem>>, %arg4: memref<64x32xbf16, #tpu.memory_space<vmem>>, %arg5: memref<64x32xbf16, #tpu.memory_space<vmem>>, %arg6: memref<32x64xbf16, #tpu.memory_space<vmem>>, %arg7: memref<16x32xf32, #tpu.memory_space<vmem>>, %arg8: memref<16x32xbf16, #tpu.memory_space<vmem>>, %arg9: memref<16x32xf32, #tpu.memory_space<vmem>>) attributes {dimension_semantics = [#tpu.dimension_semantics<parallel>, #tpu.dimension_semantics<arbitrary>], iteration_bounds = array<i64: 1, 1>, scalar_prefetch = 0 : i64, scratch_operands = 2 : i64, tpu.core_type = #tpu.core_type<tc>, window_params = [{transform_indices = @transform_0, window_bounds = array<i64: 16, 32>}, {pipeline_mode = #tpu.pipeline_mode<synchronous>, transform_indices = @transform_1, window_bounds = array<i64: 1, 32>}, {transform_indices = @transform_2, window_bounds = array<i64: 64, 32>}, {transform_indices = @transform_3, window_bounds = array<i64: 64, 32>}, {transform_indices = @transform_4, window_bounds = array<i64: 32, 64>}, {transform_indices = @transform_5, window_bounds = array<i64: 16, 32>}]} {
    %c0_i32 = arith.constant 0 : i32
    %0 = arith.cmpi eq, %arg1, %c0_i32 : i32
    %1 = arith.extui %0 : i1 to i32
    %c0_i32_0 = arith.constant 0 : i32
    %2 = arith.cmpi ne, %1, %c0_i32_0 : i32
    scf.if %2 {
      %c0_17 = arith.constant 0 : index
      %c0_18 = arith.constant 0 : index
      %24 = vector.load %arg2[%c0_17, %c0_18] : memref<16x32xf32, #tpu.memory_space<vmem>>, vector<16x32xf32>
      %25 = arith.mulf %24, %24 : vector<16x32xf32>
      %cst_19 = arith.constant dense<0.000000e+00> : vector<16xf32>
      %26 = vector.multi_reduction <add>, %25, %cst_19 [1] : vector<16x32xf32> to vector<16xf32>
      %27 = vector.shape_cast %26 : vector<16xf32> to vector<16x1xf32>
      %cst_20 = arith.constant 3.200000e+01 : f32
      %28 = vector.broadcast %cst_20 : f32 to vector<16x1xf32>
      %29 = arith.divf %27, %28 : vector<16x1xf32>
      %cst_21 = arith.constant 9.99999974E-6 : f32
      %30 = vector.broadcast %cst_21 : f32 to vector<16x1xf32>
      %31 = arith.addf %29, %30 : vector<16x1xf32>
      %32 = math.rsqrt %31 : vector<16x1xf32>
      %33 = vector.broadcast %32 : vector<16x1xf32> to vector<16x32xf32>
      %34 = arith.mulf %24, %33 : vector<16x32xf32>
      %c0_22 = arith.constant 0 : index
      %c0_23 = arith.constant 0 : index
      %35 = vector.load %arg3[%c0_22, %c0_23] : memref<1x32xf32, #tpu.memory_space<vmem>>, vector<1x32xf32>
      %36 = vector.broadcast %35 : vector<1x32xf32> to vector<16x32xf32>
      %37 = arith.mulf %34, %36 : vector<16x32xf32>
      %38 = arith.truncf %37 : vector<16x32xf32> to vector<16x32xbf16>
      %c0_24 = arith.constant 0 : index
      %c0_25 = arith.constant 0 : index
      %39 = vector.load %arg8[%c0_24, %c0_25] : memref<16x32xbf16, #tpu.memory_space<vmem>>, vector<16x32xbf16>
      tpu.vector_store %arg8[%c0_24, %c0_25], %38 {strides = array<i32>} : memref<16x32xbf16, #tpu.memory_space<vmem>>, vector<16x32xbf16>,
      %cst_26 = arith.constant 0.000000e+00 : f32
      %40 = vector.broadcast %cst_26 : f32 to vector<16x32xf32>
      %c0_27 = arith.constant 0 : index
      %c0_28 = arith.constant 0 : index
      %41 = vector.load %arg9[%c0_27, %c0_28] : memref<16x32xf32, #tpu.memory_space<vmem>>, vector<16x32xf32>
      tpu.vector_store %arg9[%c0_27, %c0_28], %40 {strides = array<i32>} : memref<16x32xf32, #tpu.memory_space<vmem>>, vector<16x32xf32>,
    } else {
    }
    %c0 = arith.constant 0 : index
    %c0_1 = arith.constant 0 : index
    %3 = vector.load %arg8[%c0, %c0_1] : memref<16x32xbf16, #tpu.memory_space<vmem>>, vector<16x32xbf16>
    %c0_2 = arith.constant 0 : index
    %c0_3 = arith.constant 0 : index
    %4 = vector.load %arg4[%c0_2, %c0_3] : memref<64x32xbf16, #tpu.memory_space<vmem>>, vector<64x32xbf16>
    %cst = arith.constant dense<0.000000e+00> : vector<16x64xf32>
    %5 = tpu.matmul %3, %4, %cst {dimension_numbers = #tpu.dot_dimension_numbers<[1], [1], [0], [0], [0, 0, 1, 0], [], []>} : vector<16x32xbf16>, vector<64x32xbf16>, vector<16x64xf32> -> vector<16x64xf32>
    %c0_4 = arith.constant 0 : index
    %c0_5 = arith.constant 0 : index
    %6 = vector.load %arg5[%c0_4, %c0_5] : memref<64x32xbf16, #tpu.memory_space<vmem>>, vector<64x32xbf16>
    %cst_6 = arith.constant dense<0.000000e+00> : vector<16x64xf32>
    %7 = tpu.matmul %3, %6, %cst_6 {dimension_numbers = #tpu.dot_dimension_numbers<[1], [1], [0], [0], [0, 0, 1, 0], [], []>} : vector<16x32xbf16>, vector<64x32xbf16>, vector<16x64xf32> -> vector<16x64xf32>
    %8 = arith.negf %5 : vector<16x64xf32>
    %9 = math.exp %8 : vector<16x64xf32>
    %cst_7 = arith.constant 1.000000e+00 : f32
    %10 = vector.broadcast %cst_7 : f32 to vector<16x64xf32>
    %11 = arith.addf %10, %9 : vector<16x64xf32>
    %12 = arith.divf %10, %11 : vector<16x64xf32>
    %13 = arith.mulf %5, %12 : vector<16x64xf32>
    %14 = arith.mulf %13, %7 : vector<16x64xf32>
    %c0_8 = arith.constant 0 : index
    %c0_9 = arith.constant 0 : index
    %15 = vector.load %arg9[%c0_8, %c0_9] : memref<16x32xf32, #tpu.memory_space<vmem>>, vector<16x32xf32>
    %16 = arith.truncf %14 : vector<16x64xf32> to vector<16x64xbf16>
    %c0_10 = arith.constant 0 : index
    %c0_11 = arith.constant 0 : index
    %17 = vector.load %arg6[%c0_10, %c0_11] : memref<32x64xbf16, #tpu.memory_space<vmem>>, vector<32x64xbf16>
    %cst_12 = arith.constant dense<0.000000e+00> : vector<16x32xf32>
    %18 = tpu.matmul %16, %17, %cst_12 {dimension_numbers = #tpu.dot_dimension_numbers<[1], [1], [0], [0], [0, 0, 1, 0], [], []>} : vector<16x64xbf16>, vector<32x64xbf16>, vector<16x32xf32> -> vector<16x32xf32>
    %19 = arith.addf %15, %18 : vector<16x32xf32>
    %c0_13 = arith.constant 0 : index
    %c0_14 = arith.constant 0 : index
    %20 = vector.load %arg9[%c0_13, %c0_14] : memref<16x32xf32, #tpu.memory_space<vmem>>, vector<16x32xf32>
    tpu.vector_store %arg9[%c0_13, %c0_14], %19 {strides = array<i32>} : memref<16x32xf32, #tpu.memory_space<vmem>>, vector<16x32xf32>,
    %c0_i32_15 = arith.constant 0 : i32
    %21 = arith.cmpi eq, %arg1, %c0_i32_15 : i32
    %22 = arith.extui %21 : i1 to i32
    %c0_i32_16 = arith.constant 0 : i32
    %23 = arith.cmpi ne, %22, %c0_i32_16 : i32
    scf.if %23 {
      %c0_17 = arith.constant 0 : index
      %c0_18 = arith.constant 0 : index
      %24 = vector.load %arg2[%c0_17, %c0_18] : memref<16x32xf32, #tpu.memory_space<vmem>>, vector<16x32xf32>
      %c0_19 = arith.constant 0 : index
      %c0_20 = arith.constant 0 : index
      %25 = vector.load %arg9[%c0_19, %c0_20] : memref<16x32xf32, #tpu.memory_space<vmem>>, vector<16x32xf32>
      %26 = arith.addf %24, %25 : vector<16x32xf32>
      %c0_21 = arith.constant 0 : index
      %c0_22 = arith.constant 0 : index
      %27 = vector.load %arg7[%c0_21, %c0_22] : memref<16x32xf32, #tpu.memory_space<vmem>>, vector<16x32xf32>
      tpu.vector_store %arg7[%c0_21, %c0_22], %26 {strides = array<i32>} : memref<16x32xf32, #tpu.memory_space<vmem>>, vector<16x32xf32>,
    } else {
    }
    return
  }
  func.func @transform_0(%arg0: i32, %arg1: i32) -> (i32, i32) {
    %c0_i32 = arith.constant 0 : i32
    %c0_i32_0 = arith.constant 0 : i32
    return %arg0, %c0_i32 : i32, i32
  }
  func.func @transform_1(%arg0: i32, %arg1: i32) -> (i32, i32) {
    %c0_i32 = arith.constant 0 : i32
    %c0_i32_0 = arith.constant 0 : i32
    %c0_i32_1 = arith.constant 0 : i32
    return %c0_i32, %c0_i32_0 : i32, i32
  }
  func.func @transform_2(%arg0: i32, %arg1: i32) -> (i32, i32) {
    %c0_i32 = arith.constant 0 : i32
    %c0_i32_0 = arith.constant 0 : i32
    return %arg1, %c0_i32 : i32, i32
  }
  func.func @transform_3(%arg0: i32, %arg1: i32) -> (i32, i32) {
    %c0_i32 = arith.constant 0 : i32
    %c0_i32_0 = arith.constant 0 : i32
    return %arg1, %c0_i32 : i32, i32
  }
  func.func @transform_4(%arg0: i32, %arg1: i32) -> (i32, i32) {
    %c0_i32 = arith.constant 0 : i32
    %c0_i32_0 = arith.constant 0 : i32
    return %c0_i32, %arg1 : i32, i32
  }
  func.func @transform_5(%arg0: i32, %arg1: i32) -> (i32, i32) {
    %c0_i32 = arith.constant 0 : i32
    %c0_i32_0 = arith.constant 0 : i32
    return %arg0, %c0_i32 : i32, i32
  }
}

module attributes {stable_mosaic.version = 11 : i64} {
  func.func @_rmsnorm_cast_kernel(%arg0: i32, %arg1: memref<16x32xf32, #tpu.memory_space<vmem>>, %arg2: memref<1x32xf32, #tpu.memory_space<vmem>>, %arg3: memref<16x32xbf16, #tpu.memory_space<vmem>>) attributes {dimension_semantics = [#tpu.dimension_semantics<parallel>], iteration_bounds = array<i64: 1>, scalar_prefetch = 0 : i64, scratch_operands = 0 : i64, tpu.core_type = #tpu.core_type<tc>, window_params = [{transform_indices = @transform_0, window_bounds = array<i64: 16, 32>}, {pipeline_mode = #tpu.pipeline_mode<synchronous>, transform_indices = @transform_1, window_bounds = array<i64: 1, 32>}, {transform_indices = @transform_2, window_bounds = array<i64: 16, 32>}]} {
    %c0 = arith.constant 0 : index
    %c0_0 = arith.constant 0 : index
    %0 = vector.load %arg1[%c0, %c0_0] : memref<16x32xf32, #tpu.memory_space<vmem>>, vector<16x32xf32>
    %1 = arith.mulf %0, %0 : vector<16x32xf32>
    %cst = arith.constant dense<0.000000e+00> : vector<16xf32>
    %2 = vector.multi_reduction <add>, %1, %cst [1] : vector<16x32xf32> to vector<16xf32>
    %3 = vector.shape_cast %2 : vector<16xf32> to vector<16x1xf32>
    %cst_1 = arith.constant 3.200000e+01 : f32
    %4 = vector.broadcast %cst_1 : f32 to vector<16x1xf32>
    %5 = arith.divf %3, %4 : vector<16x1xf32>
    %cst_2 = arith.constant 9.99999974E-6 : f32
    %6 = vector.broadcast %cst_2 : f32 to vector<16x1xf32>
    %7 = arith.addf %5, %6 : vector<16x1xf32>
    %8 = math.rsqrt %7 : vector<16x1xf32>
    %9 = vector.broadcast %8 : vector<16x1xf32> to vector<16x32xf32>
    %10 = arith.mulf %0, %9 : vector<16x32xf32>
    %c0_3 = arith.constant 0 : index
    %c0_4 = arith.constant 0 : index
    %11 = vector.load %arg2[%c0_3, %c0_4] : memref<1x32xf32, #tpu.memory_space<vmem>>, vector<1x32xf32>
    %12 = vector.broadcast %11 : vector<1x32xf32> to vector<16x32xf32>
    %13 = arith.mulf %10, %12 : vector<16x32xf32>
    %14 = arith.truncf %13 : vector<16x32xf32> to vector<16x32xbf16>
    %c0_5 = arith.constant 0 : index
    %c0_6 = arith.constant 0 : index
    %15 = vector.load %arg3[%c0_5, %c0_6] : memref<16x32xbf16, #tpu.memory_space<vmem>>, vector<16x32xbf16>
    tpu.vector_store %arg3[%c0_5, %c0_6], %14 {strides = array<i32>} : memref<16x32xbf16, #tpu.memory_space<vmem>>, vector<16x32xbf16>,
    return
  }
  func.func @transform_0(%arg0: i32) -> (i32, i32) {
    %c0_i32 = arith.constant 0 : i32
    %c0_i32_0 = arith.constant 0 : i32
    return %arg0, %c0_i32 : i32, i32
  }
  func.func @transform_1(%arg0: i32) -> (i32, i32) {
    %c0_i32 = arith.constant 0 : i32
    %c0_i32_0 = arith.constant 0 : i32
    %c0_i32_1 = arith.constant 0 : i32
    return %c0_i32, %c0_i32_0 : i32, i32
  }
  func.func @transform_2(%arg0: i32) -> (i32, i32) {
    %c0_i32 = arith.constant 0 : i32
    %c0_i32_0 = arith.constant 0 : i32
    return %arg0, %c0_i32 : i32, i32
  }
}

module attributes {stable_mosaic.version = 11 : i64} {
  func.func @_linear_kernel(%arg0: i32, %arg1: i32, %arg2: memref<16x32xbf16, #tpu.memory_space<vmem>>, %arg3: memref<128x32xbf16, #tpu.memory_space<vmem>>, %arg4: memref<16x128xf32, #tpu.memory_space<vmem>>) attributes {dimension_semantics = [#tpu.dimension_semantics<parallel>, #tpu.dimension_semantics<parallel>], iteration_bounds = array<i64: 1, 1>, scalar_prefetch = 0 : i64, scratch_operands = 0 : i64, tpu.core_type = #tpu.core_type<tc>, window_params = [{transform_indices = @transform_0, window_bounds = array<i64: 16, 32>}, {transform_indices = @transform_1, window_bounds = array<i64: 128, 32>}, {transform_indices = @transform_2, window_bounds = array<i64: 16, 128>}]} {
    %c0 = arith.constant 0 : index
    %c0_0 = arith.constant 0 : index
    %0 = vector.load %arg2[%c0, %c0_0] : memref<16x32xbf16, #tpu.memory_space<vmem>>, vector<16x32xbf16>
    %c0_1 = arith.constant 0 : index
    %c0_2 = arith.constant 0 : index
    %1 = vector.load %arg3[%c0_1, %c0_2] : memref<128x32xbf16, #tpu.memory_space<vmem>>, vector<128x32xbf16>
    %cst = arith.constant dense<0.000000e+00> : vector<16x128xf32>
    %2 = tpu.matmul %0, %1, %cst {dimension_numbers = #tpu.dot_dimension_numbers<[1], [1], [0], [0], [0, 0, 1, 0], [], []>} : vector<16x32xbf16>, vector<128x32xbf16>, vector<16x128xf32> -> vector<16x128xf32>
    %c0_3 = arith.constant 0 : index
    %c0_4 = arith.constant 0 : index
    %3 = vector.load %arg4[%c0_3, %c0_4] : memref<16x128xf32, #tpu.memory_space<vmem>>, vector<16x128xf32>
    tpu.vector_store %arg4[%c0_3, %c0_4], %2 {strides = array<i32>} : memref<16x128xf32, #tpu.memory_space<vmem>>, vector<16x128xf32>,
    return
  }
  func.func @transform_0(%arg0: i32, %arg1: i32) -> (i32, i32) {
    %c0_i32 = arith.constant 0 : i32
    %c0_i32_0 = arith.constant 0 : i32
    return %arg1, %c0_i32 : i32, i32
  }
  func.func @transform_1(%arg0: i32, %arg1: i32) -> (i32, i32) {
    %c0_i32 = arith.constant 0 : i32
    %c0_i32_0 = arith.constant 0 : i32
    return %arg0, %c0_i32 : i32, i32
  }
  func.func @transform_2(%arg0: i32, %arg1: i32) -> (i32, i32) {
    %c0_i32 = arith.constant 0 : i32
    return %arg1, %arg0 : i32, i32
  }
}

</mosaic_0001>

<bundles_post_ra>
// kernel: transformer_lm_forward.12
= control target key start
LH: loop header
LB: loop body
LE: loop exit
PB: predicated region body
PF: predicated region fallthrough
CT: control target
= control target key end

     0   :  { %8 = vsyncpa [#allocation3], 0  ;;  %s371_s0 = inlined_call_operand.hbm [shape: bf16[16,32], index: 0, kind: input, shape index: {}]   ;;  %s372_s1 = inlined_call_operand.hbm [shape: bf16[32,32], index: 1, kind: input, shape index: {}]   ;;  %s373_s2 = inlined_call_operand.hbm [shape: f32[16,32], index: 2, kind: input, shape index: {}]   ;;  %s374_s3 = inlined_call_operand.hbm [shape: f32[16,32], index: 3, kind: output, shape index: {}]  }
   0x1   :  { %9 = vsyncpa [#allocation6], 0 }
   0x2   :  { %10 = vsyncpa [#allocation4], 0  ;;  %s275_s12 = smov [#allocation5]   ;;  %s276_s14 = smov [#allocation2]  }
   0x3   :  { %s28_s13 = sshll.u32 %s275_s12, 4  ;;  %s16_s15 = sshll.u32 %s276_s14, 4  ;;  %s29_s13 = int_to_ptr.vmem [resolvable:$true] %s28_s13  ;;  %s305_s15 = int_to_ptr.vmem [resolvable:$true] %s16_s15 }
   0x4   :  { %s181_s18 = scalar_lea.hbm %s372_s1, 256 }
   0x5   :  { %p182_p0 = scmp.ne.s32.totalorder %s372_s1, %s181_s18  ;;  %p185_p1 = scmp.lt.u32.totalorder %s181_s18, %s372_s1 }
   0x7   :  { %p187_p2 = pnand %p185_p1, %p182_p0 }
   0x9   :  { %190 = shalt.err (!%p187_p2)
}
   0xa   :  { %s191_s23 = scalar_lea.vmem %s29_s13, 256  ;;  %p196_p4 = scmp.lt.s32.totalorder %s29_s13, %s29_s13 }
   0xb   :  { %p192_p3 = scmp.ne.s32.totalorder %s29_s13, %s191_s23  ;;  %p197_p5 = scmp.lt.s32.totalorder %s191_s23, %s191_s23 }
   0xd   :  { %p198_p6 = por %p197_p5, %p196_p4 }
   0xf   :  { %p199_p7 = pnand %p198_p6, %p192_p3 }
  0x11   :  { %202 = shalt.err (!%p199_p7)
}
  0x12   :  { %s277_s24 = smov 64   ;;  %s278_s25 = smov 4  }
  0x13   :  { %34 = dma.hbm_to_vmem [thread:$0]  %s372_s1, 256, %s29_s13, [#allocation6], %s277_s24, %s277_s24, %s278_s25  }
  0x14   :  { %s203_s30 = scalar_lea.hbm %s371_s0, 128 }
  0x15   :  { %p204_p8 = scmp.ne.s32.totalorder %s371_s0, %s203_s30  ;;  %p207_p9 = scmp.lt.u32.totalorder %s203_s30, %s371_s0 }
  0x17   :  { %p209_p10 = pnand %p207_p9, %p204_p8 }
  0x19   :  { %212 = shalt.err (!%p209_p10)
}
  0x1a   :  { %s213_s8 = scalar_lea.vmem %s305_s15, 128  ;;  %p218_p12 = scmp.lt.s32.totalorder %s305_s15, %s305_s15 }
  0x1b   :  { %p214_p11 = scmp.ne.s32.totalorder %s305_s15, %s213_s8  ;;  %p219_p13 = scmp.lt.s32.totalorder %s213_s8, %s213_s8 }
  0x1d   :  { %p220_p0 = por %p219_p13, %p218_p12 }
  0x1f   :  { %p221_p1 = pnand %p220_p0, %p214_p11 }
  0x21   :  { %224 = shalt.err (!%p221_p1)
}
  0x22   :  { %22 = dma.hbm_to_vmem [thread:$0]  %s371_s0, 128, %s305_s15, [#allocation3], %s277_s24, %s277_s24, %s278_s25  }
  0x23   :  { %s279_s10 = smov [#allocation7]   ;;  %s225_s14 = scalar_lea.hbm %s373_s2, 256 }
  0x24   :  { %s40_s11 = sshll.u32 %s279_s10, 4  ;;  %p226_p2 = scmp.ne.s32.totalorder %s373_s2, %s225_s14  ;;  %s41_s11 = int_to_ptr.vmem [resolvable:$true] %s40_s11 }
  0x25   :  { %p229_p3 = scmp.lt.u32.totalorder %s225_s14, %s373_s2 }
  0x27   :  { %p231_p4 = pnand %p229_p3, %p226_p2 }
  0x29   :  { %234 = shalt.err (!%p231_p4)
}
  0x2a   :  { %s235_s20 = scalar_lea.vmem %s41_s11, 256  ;;  %p240_p6 = scmp.lt.s32.totalorder %s41_s11, %s41_s11 }
  0x2b   :  { %p236_p5 = scmp.ne.s32.totalorder %s41_s11, %s235_s20  ;;  %p241_p7 = scmp.lt.s32.totalorder %s235_s20, %s235_s20 }
  0x2d   :  { %p242_p8 = por %p241_p7, %p240_p6 }
  0x2f   :  { %p243_p9 = pnand %p242_p8, %p236_p5 }
  0x31   :  { %246 = shalt.err (!%p243_p9)
}
  0x32   :  { %s280_s0 = smov 128   ;;  %s281_s15 = smov 8  }
  0x33   :  { %46 = dma.hbm_to_vmem [thread:$0]  %s373_s2, 256, %s41_s11, [#allocation6], %s280_s0, %s280_s0, %s281_s15  }
  0x34   :  { %269 = dma.done.wait [#allocation3], 128  }
  0x35   :  { %270 = vsyncadd [#allocation3], 4294967168 }
  0x36   :  { %271 = dma.done.wait [#allocation6], 512  }
  0x37   :  { %272 = vsyncadd [#allocation6], 4294966784  ;;  %v282_v0 = vmov 0.0   ;;  %vm283_vm0 = vmmov 0   ;;  %vm78_vm1 = vcmask 261120   ;;  %v178_v1 = vld [vmem:[#allocation5] sm:$0xff]  }
  0x38   :  { %160 = vmatprep.subr.bf16.mxu0 %v282_v0  ;;  %164 = vmatprep.mubr.msk.bf16.mxu0 %vm283_vm0, %v282_v0  ;;  %v83_v2 = vsel %vm78_vm1, %v178_v1, 0  ;;  %v179_v3 = vld [vmem:[#allocation5 + $0x8] sm:$0xff]   ;;  %v180_v5 = vld [vmem:[#allocation2] sm:$0xff]   ;;  %v129_v6 = vld [vmem:[#allocation7] sm:$0xff]  ;;  %s284_s2 = smov [#allocation8]  }
  0x39   :  { %161 = vmatpush3.bf16.xpose.msra.mxu0 %v83_v2  ;;  %v86_v4 = vsel %vm78_vm1, %v179_v3, 0  ;;  %v130_v8 = vld [vmem:[#allocation7 + $0x8] sm:$0xff]  ;;  %s140_s23 = sshll.u32 %s284_s2, 4  ;;  %s141_s23 = int_to_ptr.vmem [resolvable:$true] %s140_s23 }
  0x3a   :  { %162 = vmatprep.subr.bf16.mxu0 %v282_v0  ;;  %s247_s24 = scalar_lea.vmem %s141_s23, 256  ;;  %p252_p11 = scmp.lt.s32.totalorder %s141_s23, %s141_s23 }
  0x3b   :  { %p248_p10 = scmp.ne.s32.totalorder %s141_s23, %s247_s24  ;;  %p253_p12 = scmp.lt.s32.totalorder %s247_s24, %s247_s24 }
  0x3d   :  { %p254_p13 = por %p253_p12, %p252_p11 }
  0x3f   :  { %p255_p0 = pnand %p254_p13, %p248_p10 }
  0x41   :  { %163 = vmatpush3.bf16.xpose.msra.mxu0 %v86_v4 }
  0x48   :  { %165 = vmatmul.mubr.msk.bf16.vlgmr.msra.gmra.mrb[0].mxu0 %vm78_vm1, %v180_v5 }
 0x11b   :  { %v122_v7 = vpop.f32.mrb[0].mxu0 }
 0x11c   :  { %v131_v9 = vadd.f32 %v129_v6, %v122_v7  ;;  %v166_v10 = vpop.f32.mrb[1].mxu0 }
 0x11d   :  { %v125_v11 = vpop.f32.mrb[2].mxu0 }
 0x11e   :  { %133 = vst.msk [vmem:[#allocation8] sm:$0xff] %vm78_vm1, %v131_v9  ;;  %v132_v12 = vadd.f32 %v130_v8, %v125_v11  ;;  %v167_v13 = vpop.f32.mrb[3].mxu0 }
 0x120   :  { %134 = vst.msk [vmem:[#allocation8 + $0x8] sm:$0xff] %vm78_vm1, %v132_v12 }
 0x121   :  { %258 = shalt.err (!%p255_p0)
}
 0x122   :  { %s259_s27 = scalar_lea.hbm %s374_s3, 256 }
 0x123   :  { %p260_p1 = scmp.ne.s32.totalorder %s374_s3, %s259_s27  ;;  %p263_p2 = scmp.lt.u32.totalorder %s259_s27, %s374_s3 }
 0x125   :  { %p265_p3 = pnand %p263_p2, %p260_p1 }
 0x127   :  { %268 = shalt.err (!%p265_p3)
}
 0x128   :  { %146 = dma.vmem_to_hbm [thread:$0]  %s141_s23, 256, %s374_s3, [#allocation4], %s280_s0, %s280_s0, %s281_s15  }
 0x129   :  { %273 = dma.done.wait [#allocation4], 256  }
 0x12a   :  { %274 = vsyncadd [#allocation4], 4294967040 }
 0x12b   :  { %150 = vsyncpa [#allocation3], 1 }
 0x12c   :  { %151 = vsyncpa [#allocation6], 1 }
 0x12d   :  { %152 = vsyncpa [#allocation4], 1 }

// kernel: transformer_lm_forward.10
= control target key start
LH: loop header
LB: loop body
LE: loop exit
PB: predicated region body
PF: predicated region fallthrough
CT: control target
= control target key end

     0   :  { %8 = vsyncpa [#allocation4], 0  ;;  %s475_s0 = inlined_call_operand.hbm [shape: f32[16,32], index: 0, kind: input, shape index: {}]   ;;  %s476_s1 = inlined_call_operand.hbm [shape: f32[1,32], index: 1, kind: input, shape index: {}]   ;;  %s477_s2 = inlined_call_operand.hbm [shape: bf16[96,32], index: 2, kind: input, shape index: {}]   ;;  %s478_s3 = inlined_call_operand.hbm [shape: bf16[16,96], index: 3, kind: output, shape index: {}]  }
   0x1   :  { %9 = vsyncpa [#allocation7], 0 }
   0x2   :  { %10 = vsyncpa [#allocation5], 0  ;;  %s374_s12 = smov [#allocation6]   ;;  %s375_s14 = smov [#allocation3]  }
   0x3   :  { %s29_s13 = sshll.u32 %s374_s12, 4  ;;  %s16_s15 = sshll.u32 %s375_s14, 4  ;;  %s30_s13 = int_to_ptr.vmem [resolvable:$true] %s29_s13  ;;  %s404_s15 = int_to_ptr.vmem [resolvable:$true] %s16_s15 }
   0x4   :  { %s280_s18 = scalar_lea.hbm %s476_s1, 16 }
   0x5   :  { %p281_p0 = scmp.ne.s32.totalorder %s476_s1, %s280_s18  ;;  %p284_p1 = scmp.lt.u32.totalorder %s280_s18, %s476_s1 }
   0x7   :  { %p286_p2 = pnand %p284_p1, %p281_p0 }
   0x9   :  { %289 = shalt.err (!%p286_p2)
}
   0xa   :  { %s290_s23 = scalar_lea.vmem %s30_s13, 16  ;;  %s294_s24 = scalar_lea.vmem %s30_s13, 32 }
   0xb   :  { %p291_p3 = scmp.ne.s32.totalorder %s30_s13, %s290_s23  ;;  %p295_p4 = scmp.lt.s32.totalorder %s30_s13, %s30_s13 }
   0xc   :  { %p296_p5 = scmp.lt.s32.totalorder %s294_s24, %s290_s23 }
   0xe   :  { %p297_p6 = por %p296_p5, %p295_p4 }
  0x10   :  { %p298_p7 = pnand %p297_p6, %p291_p3 }
  0x12   :  { %301 = shalt.err (!%p298_p7)
}
  0x13   :  { %32 = dma.hbm_to_vmem [thread:$0]  %s476_s1, 16, %s30_s13, [#allocation7]  }
  0x14   :  { %s302_s29 = scalar_lea.hbm %s475_s0, 256 }
  0x15   :  { %p303_p8 = scmp.ne.s32.totalorder %s475_s0, %s302_s29  ;;  %p306_p9 = scmp.lt.u32.totalorder %s302_s29, %s475_s0 }
  0x17   :  { %p308_p10 = pnand %p306_p9, %p303_p8 }
  0x19   :  { %311 = shalt.err (!%p308_p10)
}
  0x1a   :  { %s312_s7 = scalar_lea.vmem %s404_s15, 256  ;;  %p317_p12 = scmp.lt.s32.totalorder %s404_s15, %s404_s15 }
  0x1b   :  { %p313_p11 = scmp.ne.s32.totalorder %s404_s15, %s312_s7  ;;  %p318_p13 = scmp.lt.s32.totalorder %s312_s7, %s312_s7 }
  0x1d   :  { %p319_p0 = por %p318_p13, %p317_p12 }
  0x1f   :  { %p320_p1 = pnand %p319_p0, %p313_p11 }
  0x21   :  { %323 = shalt.err (!%p320_p1)
}
  0x22   :  { %s376_s1 = smov 128   ;;  %s377_s8 = smov 8  }
  0x23   :  { %22 = dma.hbm_to_vmem [thread:$0]  %s475_s0, 256, %s404_s15, [#allocation4], %s376_s1, %s376_s1, %s377_s8  }
  0x24   :  { %s378_s11 = smov [#allocation8]   ;;  %s324_s16 = scalar_lea.hbm %s477_s2, 768 }
  0x25   :  { %s38_s12 = sshll.u32 %s378_s11, 4  ;;  %p325_p2 = scmp.ne.s32.totalorder %s477_s2, %s324_s16  ;;  %s39_s12 = int_to_ptr.vmem [resolvable:$true] %s38_s12 }
  0x26   :  { %p328_p3 = scmp.lt.u32.totalorder %s324_s16, %s477_s2 }
  0x28   :  { %p330_p4 = pnand %p328_p3, %p325_p2 }
  0x2a   :  { %333 = shalt.err (!%p330_p4)
}
  0x2b   :  { %s334_s21 = scalar_lea.vmem %s39_s12, 768  ;;  %p339_p6 = scmp.lt.s32.totalorder %s39_s12, %s39_s12 }
  0x2c   :  { %p335_p5 = scmp.ne.s32.totalorder %s39_s12, %s334_s21  ;;  %p340_p7 = scmp.lt.s32.totalorder %s334_s21, %s334_s21 }
  0x2e   :  { %p341_p8 = por %p340_p7, %p339_p6 }
  0x30   :  { %p342_p9 = pnand %p341_p8, %p335_p5 }
  0x32   :  { %345 = shalt.err (!%p342_p9)
}
  0x33   :  { %s379_s0 = smov 64   ;;  %s380_s15 = smov 4  }
  0x34   :  { %44 = dma.hbm_to_vmem [thread:$0]  %s477_s2, 768, %s39_s12, [#allocation7], %s379_s0, %s379_s0, %s380_s15  }
  0x35   :  { %368 = dma.done.wait [#allocation4], 256  }
  0x36   :  { %369 = vsyncadd [#allocation4], 4294967040 }
  0x37   :  { %370 = dma.done.wait [#allocation7], 784  }
  0x38   :  { %371 = vsyncadd [#allocation7], 4294966512  ;;  %v381_v0 = vmov 0.0   ;;  %v59_v1 = vld [vmem:[#allocation3] sm:$0xff]  ;;  %vm63_vm0 = vcmask 261120   ;;  %v60_v2 = vld [vmem:[#allocation3 + $0x8] sm:$0xff] }
  0x39   :  { %244 = vmatprep.subr.bf16.mxu0 %v381_v0  ;;  %v61_v3 = vmul.f32 %v59_v1, %v59_v1  ;;  %v62_v4 = vmul.f32 %v60_v2, %v60_v2  ;;  %v270_v5 = vld [vmem:[#allocation8] sm:$0xff]   ;;  %v271_v9 = vld [vmem:[#allocation8 + $0x8] sm:$0xff]   ;;  %v272_v11 = vld [vmem:[#allocation8 + $0x10] sm:$0xff]   ;;  %vm382_vm1 = vmmov 0   ;;  %vm204_vm2 = vcmask 781312   ;;  %s383_s2 = smov [#allocation9]  }
  0x3a   :  { %v138_v7 = vsel %vm63_vm0, %v270_v5, 0  ;;  %v141_v10 = vsel %vm63_vm0, %v271_v9, 0  ;;  %v144_v12 = vsel %vm63_vm0, %v272_v11, 0  ;;  %v273_v13 = vld [vmem:[#allocation8 + $0x18] sm:$0xff]   ;;  %v274_v15 = vld [vmem:[#allocation8 + $0x20] sm:$0xff]   ;;  %v275_v17 = vld [vmem:[#allocation8 + $0x28] sm:$0xff]   ;;  %256 = vmatprep.mubr.msk.bf16.mxu0 %vm382_vm1, %v381_v0 }
  0x3b   :  { %v64_v6 = vsel %vm63_vm0, %v61_v3, 0.0  ;;  %v67_v8 = vsel %vm63_vm0, %v62_v4, 0.0  ;;  %245 = vmatpush3.bf16.xpose.msra.mxu0 %v138_v7  ;;  %v147_v14 = vsel %vm63_vm0, %v273_v13, 0  ;;  %v150_v16 = vsel %vm63_vm0, %v274_v15, 0  ;;  %v225_v28 = vld [vmem:[#allocation6] ss:$0 sm:$0xff] }
  0x3c   :  { %65 = vadd.xlane.f32.xlu0 %v64_v6  ;;  %246 = vmatprep.subr.bf16.mxu0 %v381_v0  ;;  %v153_v18 = vsel %vm63_vm0, %v275_v17, 0  ;;  %s212_s24 = sshll.u32 %s383_s2, 4  ;;  %s213_s24 = int_to_ptr.vmem [resolvable:$true] %s212_s24 }
  0x3d   :  { %s346_s25 = scalar_lea.vmem %s213_s24, 128  ;;  %p351_p11 = scmp.lt.s32.totalorder %s213_s24, %s213_s24 }
  0x3e   :  { %p347_p10 = scmp.ne.s32.totalorder %s213_s24, %s346_s25  ;;  %p352_p12 = scmp.lt.s32.totalorder %s346_s25, %s346_s25 }
  0x40   :  { %68 = vadd.xlane.f32.xlu0 %v67_v8  ;;  %p353_p13 = por %p352_p12, %p351_p11 }
  0x42   :  { %p354_p0 = pnand %p353_p13, %p347_p10 }
  0x43   :  { %247 = vmatpush3.bf16.xpose.msra.mxu0 %v141_v10 }
  0x44   :  { %248 = vmatprep.subr.bf16.mxu0 %v381_v0 }
  0x4b   :  { %249 = vmatpush3.bf16.xpose.msra.mxu0 %v144_v12 }
  0x4c   :  { %250 = vmatprep.subr.bf16.mxu0 %v381_v0 }
  0x53   :  { %251 = vmatpush3.bf16.xpose.msra.mxu0 %v147_v14 }
  0x54   :  { %252 = vmatprep.subr.bf16.mxu0 %v381_v0 }
  0x5b   :  { %253 = vmatpush3.bf16.xpose.msra.mxu0 %v150_v16 }
  0x5c   :  { %254 = vmatprep.subr.bf16.mxu0 %v381_v0 }
  0x63   :  { %255 = vmatpush3.bf16.xpose.msra.mxu0 %v153_v18 }
  0xc9   :  { %v66_v19 = vpop.xlane.xlu0 %65 }
  0xca   :  { %v71_v20 = vmul.f32 0.03125, %v66_v19 }
  0xcc   :  { %v73_v21 = vadd.f32 1e-05, %v71_v20 }
  0xcd   :  { %v69_v22 = vpop.xlane.xlu0 %68 }
  0xce   :  { %276 = vrsqrt.f32 %v73_v21  ;;  %v72_v23 = vmul.f32 0.03125, %v69_v22 }
  0xd0   :  { %v74_v24 = vadd.f32 1e-05, %v72_v23 }
  0xd2   :  { %278 = vrsqrt.f32 %v74_v24 }
  0xd8   :  { %v277_v25 = vpop.eup %276 }
  0xd9   :  { %v77_v26 = vmul.f32 %v277_v25, %v59_v1 }
  0xdb   :  { %v86_v30 = vmul.f32 %v225_v28, %v77_v26 }
  0xdc   :  { %v279_v27 = vpop.eup %278 }
  0xdd   :  { %v78_v29 = vmul.f32 %v279_v27, %v60_v2 }
  0xdf   :  { %v87_v31 = vmul.f32 %v225_v28, %v78_v29 }
  0xe1   :  { %v88_v32 = vpack.c.bf16 %v87_v31, %v86_v30 }
  0xe3   :  { %89 = vst.msk [vmem:[#allocation2] sm:$0xff] %vm63_vm0, %v88_v32 }
  0xea   :  { %v90_v33 = vld [vmem:[#allocation2] sm:$0xff] }
  0xeb   :  { %257 = vmatmul.mubr.msk.bf16.vlgmr.msra.gmra.mrb[0].mxu0 %vm63_vm0, %v90_v33 }
 0x1be   :  { %v189_v34 = vpop.f32.mrb[0].mxu0 }
 0x1bf   :  { %v235_v35 = vpack.c.bf16 %v189_v34, %v189_v34  ;;  %v258_v36 = vpop.f32.mrb[1].mxu0 }
 0x1c0   :  { %v192_v37 = vpop.f32.mrb[2].mxu0 }
 0x1c1   :  { %v236_v38 = vpack.c.bf16 %v192_v37, %v192_v37  ;;  %v259_v39 = vpop.f32.mrb[3].mxu0  ;;  %205 = vst.msk [vmem:[#allocation9] sm:$0xf] %vm204_vm2, %v235_v35 }
 0x1c3   :  { %206 = vst.msk [vmem:[#allocation9 + $0x4] sm:$0xf] %vm204_vm2, %v236_v38 }
 0x1c4   :  { %357 = shalt.err (!%p354_p0)
}
 0x1c5   :  { %s358_s28 = scalar_lea.hbm %s478_s3, 128 }
 0x1c6   :  { %p359_p1 = scmp.ne.s32.totalorder %s478_s3, %s358_s28  ;;  %p362_p2 = scmp.lt.u32.totalorder %s358_s28, %s478_s3 }
 0x1c8   :  { %p364_p3 = pnand %p362_p2, %p359_p1 }
 0x1ca   :  { %367 = shalt.err (!%p364_p3)
}
 0x1cb   :  { %218 = dma.vmem_to_hbm [thread:$0]  %s213_s24, 128, %s478_s3, [#allocation5], %s379_s0, %s379_s0, %s380_s15  }
 0x1cc   :  { %372 = dma.done.wait [#allocation5], 128  }
 0x1cd   :  { %373 = vsyncadd [#allocation5], 4294967168 }
 0x1ce   :  { %222 = vsyncpa [#allocation4], 1 }
 0x1cf   :  { %223 = vsyncpa [#allocation7], 1 }
 0x1d0   :  { %224 = vsyncpa [#allocation5], 1 }

// kernel: transformer_lm_forward.11
= control target key start
LH: loop header
LB: loop body
LE: loop exit
PB: predicated region body
PF: predicated region fallthrough
CT: control target
= control target key end

     0   :  { %6 = vsyncpa [#allocation4], 0  ;;  %s885_s0 = inlined_call_operand.hbm [shape: bf16[2,8,96], index: 0, kind: input, shape index: {}]   ;;  %s886_s1 = inlined_call_operand.hbm [shape: bf16[2,8,32], index: 1, kind: output, shape index: {}]  }
   0x1   :  { %8 = vsyncpa [#allocation4 + $0x1], 0 }
   0x2   :  { %9 = vsyncpa [#allocation5], 0 }
   0x3   :  { %11 = vsyncpa [#allocation5 + $0x1], 0  ;;  %s702_s6 = smov 0   ;;  %s704_s7 = smov 0  }
   0x4   :  { %s706_s8 = smov 0   ;;  %s708_s9 = smov 0  }
   0x5 LB: > { %s723_s10 = sadd.s32 4294967295, %s680_s9   ;;  %s470_s11 = sadd.s32 4294967294, %s680_s9   ;;  %s680_s9 = sphi %s708_s9, %s901_s9   ;;  %s676_s8 = sphi %s706_s8, %s900_s8   ;;  %s672_s7 = sphi %s704_s7, %s899_s7   ;;  %s668_s6 = sphi %s702_s6, %s898_s6  }
   0x6   : > { %s727_s12 = sadd.s32 1, %s680_s9   ;;  %s24_s13 = sadd.s32 1, %s676_s8 }
   0x7   : > { %s21_s14 = ssub.s32 %s680_s9, %s727_s12  ;;  %p31_p0 = scmp.ne.s32.totalorder %s676_s8, %s672_s7 }
   0x8   : > { %p22_p1 = scmp.eq.s32.totalorder %s21_s14, 0  ;;  %p32_p2 = scmp.eq.s32.totalorder %s680_s9, 0 }
   0x9   : > { %p37_p3 = scmp.ne.s32.totalorder %s672_s7, %s668_s6  ;;  %p38_p4 = scmp.eq.s32.totalorder %s723_s10, 0 }
   0xa   : > { %s739_s15 = scalar_select %p22_p1, %s676_s8, %s24_s13  }
   0xb   : > { %p741_p5 = por %p32_p2, %p31_p0  ;;  %p745_p6 = por %p38_p4, %p37_p3 }
   0xc   : > { %p61_p7 = scmp.eq.s32.totalorder %s723_s10, 1  ;;  %p67_p8 = scmp.eq.s32.totalorder %s470_s11, 1 }
   0xd   : > { %p533_p10 = scmp.lt.s32.totalorder %s680_s9, 2  ;;  %s87_s20 = sand.u32 1, %s676_s8  }
   0xe   : > { %p752_p11 = por %p61_p7, %p31_p0  ;;  %p756_p12 = por %p67_p8, %p37_p3 }
   0xf   : > { %s474_s21 = sshll.u32 %s680_s9, 6  ;;  %s473_s22 = sshll.u32 %s87_s20, 2 }
  0x10   : > { %s890_s18 = scalar_select %p752_p11, 1, 0 }
  0x11   : > { %s891_s19 = scalar_select %p756_p12, 1, 0 }
  0x12   : > { %s765_s25 = scalar_lea.hbm %s885_s0, %s474_s21  ;;  %s91_s26 = scalar_lea.vmem [#allocation3], %s473_s22 }
  0x13   : > { %s98_s27 = sshll.u32 %s91_s26, 4  ;;  %p769_p13 = pnand %p533_p10, %p741_p5  ;;  %s773_s27 = int_to_ptr.vmem [resolvable:$true] %s98_s27 }
  0x14   : > { %s88_s29 = scalar_lea.sflag [#allocation4], %s87_s20  ;;  %s584_s30 = scalar_lea.hbm %s765_s25, 64 }
  0x15   : > { %p585_p2 = scmp.ne.s32.totalorder %s765_s25, %s584_s30  ;;  %p586_p3 = pneg %p769_p13 }
  0x16   : > { %s589_s4 = scalar_lea.hbm %s885_s0, 128  ;;  %p590_p5 = scmp.lt.u32.totalorder %s765_s25, %s885_s0 }
  0x17   : > { %p587_p4 = pnand %p586_p3, %p585_p2  ;;  %p591_p8 = scmp.lt.u32.totalorder %s589_s4, %s584_s30 }
  0x18   : > { %p593_p9 = scmp.lt.u32.totalorder %s584_s30, %s765_s25 }
  0x19   : > { %p588_p7 = pneg %p587_p4  ;;  %p592_p10 = por %p591_p8, %p590_p5 }
  0x1b   : > { %p594_p0 = por %p593_p9, %p592_p10 }
  0x1d   : > { %p595_p1 = pnand %p594_p0, %p588_p7 }
  0x1f   : > { %598 = shalt.err (!%p595_p1)
}
  0x20   : > { %s599_s13 = scalar_lea.vmem %s773_s27, 64  ;;  %s682_s14 = smov [#allocation3]  }
  0x21   : > { %p600_p2 = scmp.ne.s32.totalorder %s773_s27, %s599_s13  ;;  %s604_s16 = sshll.u32 %s682_s14, 4  ;;  %s605_s16 = int_to_ptr.vmem [resolvable:$false] %s604_s16 }
  0x22   : > { %s606_s20 = scalar_lea.vmem %s605_s16, 128  ;;  %p607_p11 = scmp.lt.s32.totalorder %s773_s27, %s605_s16 }
  0x23   : > { %p602_p4 = pnand %p600_p2, %p586_p3  ;;  %p608_p5 = scmp.lt.s32.totalorder %s606_s20, %s599_s13 }
  0x25   : > { %p603_p12 = pneg %p602_p4  ;;  %p609_p8 = por %p608_p5, %p607_p11 }
  0x27   : > { %p610_p9 = pnand %p609_p8, %p603_p12 }
  0x29   : > { %613 = shalt.err (!%p610_p9)
}
  0x2a   : > { %528 = dma.hbm_to_vmem [thread:$0]  (!%p769_p13), %s765_s25, 64, %s773_s27, %s88_s29  }
  0x2b   : > { %p893_p0 = scmp.lt.s32.totalorder %s680_s9, 3  ;;  %p894_p1 = scmp.ge.s32.totalorder %s680_s9, 1 }
  0x2d   : > { %p104_p3 = pnand %p894_p1, %p893_p0 }
  0x2e   : > { %s807_s21 = sand.u32 (!%p104_p3), 1, %s672_s7  }
  0x2f   : > { %107 = sbr.rel (%p104_p3) target bundleno = 1288 (0x508), region = 24  ;;  %s476_s22 = sshll.u32 (!%p104_p3), %s807_s21, 2 }
  0x30   : > { %s110_s23 = scalar_lea.sflag (!%p104_p3), [#allocation4], %s807_s21  ;;  %s113_s24 = scalar_lea.vmem (!%p104_p3), [#allocation3], %s476_s22 }
  0x36   : > { %659 = dma.done.wait (%p745_p6), %s110_s23, 64  }
  0x37   : > { %661 = vsyncadd (%p745_p6), %s110_s23, 4294967232  ;;  %v683_v0 = vmov 0.0   ;;  %vm684_vm0 = vmmov 0   ;;  %v133_v1 = vld [vmem:[%s113_s24] sm:$0xf]  ;;  %s685_s25 = smov 96   ;;  %v134_v8 = vlaneseq }
  0x38   : > { %497 = vmatprep.subr.bf16.mxu0 %v683_v0  ;;  %499 = vmatprep.mubr.msk.bf16.mxu0 %vm684_vm0, %v683_v0  ;;  %v478_v2 = vcombine.low %v133_v1, %v133_v1  ;;  %v139_v3 = vunpack.c.l.bf16 %v133_v1  ;;  %vm147_vm1 = vcmask 130048   ;;  %s686_s17 = smov 64   ;;  %s687_s26 = smov 80   ;;  %vm195_vm3 = vcmask 64512  }
  0x39   : > { %503 = vmatprep.subr.bf16.mxu1 %v683_v0  ;;  %505 = vmatprep.mubr.msk.bf16.mxu1 %vm684_vm0, %v683_v0  ;;  %s688_s27 = smov 112   ;;  %v135_v9 = vshrl.u32 %v134_v8, 7  ;;  %v137_v10 = vand.u32 127, %v134_v8  ;;  %vm211_vm4 = vcmask 1043456   ;;  %s689_s28 = smov 48   ;;  %vm259_vm5 = vcmask 125952  }
  0x3a   : > { %145 = vrot.lane.b32.xlu0 %v478_v2, %s685_s25  ;;  %v140_v6 = vmul.f32 0.25, %v139_v3  ;;  %206 = vrot.lane.b32.xlu1 %v478_v2, %s686_s17  ;;  %s690_s29 = smov 16   ;;  %vm381_vm6 = vcmask 257152   ;;  %s485_s30 = sshll.u32 %s723_s10, 6  ;;  %vm384_vm7 = vcmask 257024  }
  0x3b   : > { %vm138_vm2 = vcmp.le.s32.totalorder %v137_v10, %v135_v9  ;;  %s131_s2 = scalar_lea.vmem [#allocation6], %s476_s22  ;;  %s841_s11 = scalar_lea.hbm %s886_s1, %s485_s30 }
  0x3c   : > { %v141_v7 = vpack.c.bf16 %v140_v6, %v140_v6  ;;  %s400_s3 = sshll.u32 %s131_s2, 4  ;;  %s387_s13 = scalar_lea.sflag [#allocation5], %s807_s21  ;;  %s843_s3 = int_to_ptr.vmem [resolvable:$true] %s400_s3 }
  0x3d   : > { %s614_s14 = scalar_lea.vmem %s843_s3, 64  ;;  %p895_p11 = scmp.ne.s32.totalorder %s890_s18, 0 }
  0x3e   : > { %264 = vrot.lane.b32.xlu1 %v478_v2, %s687_s26  ;;  %p615_p6 = scmp.ne.s32.totalorder %s843_s3, %s614_s14  ;;  %s691_s10 = smov [#allocation6]  }
  0x3f   : > { %s618_s16 = sshll.u32 %s691_s10, 4  ;;  %s619_s16 = int_to_ptr.vmem [resolvable:$false] %s618_s16 }
  0x40   : > { %p616_p12 = pnand %p615_p6, %p895_p11  ;;  %s620_s20 = scalar_lea.vmem %s619_s16, 128 }
  0x41   : > { %p621_p7 = scmp.lt.s32.totalorder %s843_s3, %s619_s16  ;;  %p622_p10 = scmp.lt.s32.totalorder %s620_s20, %s614_s14 }
  0x42   : > { %262 = vrot.lane.b32.xlu1 %v141_v7, %s688_s27  ;;  %p617_p13 = pneg %p616_p12 }
  0x43   : > { %p623_p2 = por %p622_p10, %p621_p7 }
  0x45   : > { %p624_p4 = pnand %p623_p2, %p617_p13 }
  0xac   : > { %v146_v4 = vpop.permute.xlu0 %145  ;;  %v207_v17 = vpop.permute.xlu1 %206 }
  0xad   : > { %v152_v5 = vsel %vm147_vm1, %v146_v4, 0  ;;  %v213_v18 = vsel %vm211_vm4, %v207_v17, 0 }
  0xae   : > { %498 = vmatpush3.bf16.xpose.msra.mxu0 %v152_v5  ;;  %504 = vmatpush3.bf16.msra.mxu1 %v213_v18 }
  0xaf   : > { %515 = vmatprep.subr.bf16.mxu0 %v683_v0  ;;  %509 = vmatprep.subr.bf16.mxu1 %v683_v0 }
  0xb0   : > { %v265_v22 = vpop.permute.xlu1 %264 }
  0xb1   : > { %v270_v24 = vsel %vm147_vm1, %v265_v22, 0 }
  0xb4   : > { %v263_v26 = vpop.permute.xlu1 %262 }
  0xb5   : > { %500 = vmatmul.mubr.msk.bf16.vlgmr.msra.gmra.mrb[0].mxu0 %vm147_vm1, %v141_v7 }
  0xb6   : > { %517 = vmatprep.mubr.msk.bf16.mxu0 %vm684_vm0, %v683_v0 }
 0x188   : > { %v188_v11 = vpop.f32.mrb[0].mxu0 }
 0x189   : > { %v194_v12 = vsel %vm138_vm2, %v188_v11, -inf  ;;  %v501_v13 = vpop.f32.mrb[1].mxu0 }
 0x18a   : > { %v191_v14 = vpop.f32.mrb[2].mxu0  ;;  %v196_v15 = vsel %vm195_vm3, %v194_v12, -inf }
 0x18b   : > { %197 = vmax.xlane.f32.xlu0 %v196_v15  ;;  %v502_v16 = vpop.f32.mrb[3].mxu0 }
 0x1a1   : > { %323 = vrot.lane.b32.xlu0 %v478_v2, %s689_s28 }
 0x218   : > { %v198_v19 = vpop.xlane.xlu0 %197 }
 0x219   : > { %v199_v20 = vsub.f32 %v194_v12, %v198_v19 }
 0x21b   : > { %v200_v21 = vmul.f32 1.442695, %v199_v20 }
 0x21c   : > { %v324_v37 = vpop.permute.xlu0 %323 }
 0x21d   : > { %576 = vpow2.f32 %v200_v21  ;;  %v329_v38 = vsel %vm211_vm4, %v324_v37, 0 }
 0x21e   : > { %516 = vmatpush3.bf16.msra.mxu0 %v329_v38 }
 0x227   : > { %v577_v23 = vpop.eup %576 }
 0x228   : > { %v205_v25 = vpack.c.bf16 %v577_v23, %v577_v23  ;;  %v202_v45 = vsel %vm195_vm3, %v577_v23, 0.0 }
 0x22a   : > { %506 = vmatmul.mubr.msk.bf16.vlgmr.msra.gmra.mrb[0].mxu1 %vm195_vm3, %v205_v25 }
 0x22b   : > { %510 = vmatpush3.bf16.xpose.msra.mxu1 %v270_v24  ;;  %511 = vmatprep.mubr.msk.bf16.mxu1 %vm684_vm0, %v683_v0 }
 0x232   : > { %512 = vmatmul.mubr.msk.bf16.vlgmr.msra.gmra.mrb[4].mxu1 %vm147_vm1, %v263_v26 }
 0x2fd   : > { %v249_v27 = vpop.f32.mrb[0].mxu1 }
 0x2fe   : > { %v507_v28 = vpop.f32.mrb[1].mxu1 }
 0x2ff   : > { %v252_v29 = vpop.f32.mrb[2].mxu1 }
 0x300   : > { %v508_v30 = vpop.f32.mrb[3].mxu1 }
 0x305   : > { %v306_v31 = vpop.f32.mrb[4].mxu1 }
 0x306   : > { %v312_v32 = vsel %vm138_vm2, %v306_v31, -inf  ;;  %v513_v33 = vpop.f32.mrb[5].mxu1 }
 0x307   : > { %v309_v34 = vpop.f32.mrb[6].mxu1  ;;  %v313_v35 = vsel %vm195_vm3, %v312_v32, -inf }
 0x308   : > { %314 = vmax.xlane.f32.xlu1 %v313_v35  ;;  %v514_v36 = vpop.f32.mrb[7].mxu1 }
 0x395   : > { %v315_v39 = vpop.xlane.xlu1 %314 }
 0x396   : > { %v316_v40 = vsub.f32 %v312_v32, %v315_v39 }
 0x398   : > { %v317_v41 = vmul.f32 1.442695, %v316_v40 }
 0x39a   : > { %578 = vpow2.f32 %v317_v41 }
 0x3a4   : > { %v579_v42 = vpop.eup %578 }
 0x3a5   : > { %v319_v43 = vsel %vm195_vm3, %v579_v42, 0.0  ;;  %v322_v44 = vpack.c.bf16 %v579_v42, %v579_v42 }
 0x3a6   : > { %320 = vadd.xlane.f32.xlu1 %v319_v43 }
 0x3a7   : > { %518 = vmatmul.mubr.msk.bf16.vlgmr.msra.gmra.mrb[4].mxu0 %vm195_vm3, %v322_v44 }
 0x3aa   : > { %203 = vadd.xlane.f32.xlu1 %v202_v45 }
 0x433   : > { %v321_v46 = vpop.xlane.xlu1 %320 }
 0x437   : > { %v204_v47 = vpop.xlane.xlu1 %203 }
 0x438   : > { %580 = vrcp.f32 %v204_v47 }
 0x439   : > { %582 = vrcp.f32 %v321_v46 }
 0x442   : > { %v581_v48 = vpop.eup %580 }
 0x443   : > { %v257_v49 = vmul.f32 %v581_v48, %v249_v27  ;;  %v583_v51 = vpop.eup %582 }
 0x445   : > { %v258_v50 = vpack.c.bf16 %v257_v49, %v257_v49 }
 0x447   : > { %260 = vst.msk [vmem:[#allocation2] sm:$0xf] %vm259_vm5, %v258_v50 }
 0x47a   : > { %v365_v52 = vpop.f32.mrb[4].mxu0 }
 0x47b   : > { %v373_v53 = vmul.f32 %v583_v51, %v365_v52  ;;  %v519_v54 = vpop.f32.mrb[5].mxu0 }
 0x47c   : > { %v368_v55 = vpop.f32.mrb[6].mxu0 }
 0x47d   : > { %v488_v56 = vpack.c.bf16 %v373_v53, %v373_v53  ;;  %v520_v57 = vpop.f32.mrb[7].mxu0 }
 0x47f   : > { %378 = vrot.lane.b32.xlu1 %v488_v56, %s690_s29 }
 0x4f1   : > { %v379_v58 = vpop.permute.xlu1 %378 }
 0x4f2   : > { %382 = vst.msk [vmem:[#allocation2] sm:$0xf] %vm381_vm6, %v379_v58 }
 0x4f9   : > { %v383_v59 = vld [vmem:[#allocation2] sm:$0xf] }
 0x4fa   : > { %385 = vst.msk [vmem:[%s131_s2] sm:$0xf] %vm384_vm7, %v383_v59 }
 0x4fb   : > { %627 = shalt.err (!%p624_p4)
}
 0x4fc   : > { %s628_s21 = scalar_lea.hbm %s841_s11, 64  ;;  %s632_s24 = scalar_lea.hbm %s886_s1, 128 }
 0x4fd   : > { %p629_p5 = scmp.ne.s32.totalorder %s841_s11, %s628_s21  ;;  %p633_p0 = scmp.lt.u32.totalorder %s841_s11, %s886_s1 }
 0x4fe   : > { %p634_p1 = scmp.lt.u32.totalorder %s632_s24, %s628_s21  ;;  %p636_p6 = scmp.lt.u32.totalorder %s628_s21, %s841_s11 }
 0x4ff   : > { %p630_p8 = pnand %p629_p5, %p895_p11 }
 0x500   : > { %p635_p3 = por %p634_p1, %p633_p0 }
 0x501   : > { %p631_p9 = pneg %p630_p8 }
 0x502   : > { %p637_p12 = por %p636_p6, %p635_p3 }
 0x504   : > { %p638_p13 = pnand %p637_p12, %p631_p9 }
 0x506   : > { %641 = shalt.err (!%p638_p13)
}
 0x507   : > { %523 = dma.vmem_to_hbm [thread:$0]  (%p895_p11), %s843_s3, 64, %s841_s11, %s387_s13  }
 0x508 PF: > { %s412_s26 = sand.u32 1, %s668_s6   ;;  %p896_p7 = scmp.ne.s32.totalorder %s891_s19, 0 }
 0x509   : > { %p897_p10 = scmp.ge.s32.totalorder %s680_s9, 2  ;;  %s413_s27 = scalar_lea.sflag [#allocation5], %s412_s26 }
 0x50b   : > { %p530_p2 = pnand %p897_p10, %p896_p7 }
 0x50d   : > { %663 = dma.done.wait (!%p530_p2), %s413_s27, 64  }
 0x50e   : > { %665 = vsyncadd (!%p530_p2), %s413_s27, 4294967232  ;;  %p14_p4 = scmp.ge.s32.totalorder %s727_s12, 4   ;;  %s898_s6 = smov %s672_s7 }
 0x50f   : > { %s899_s7 = smov %s676_s8  ;;  %s900_s8 = smov %s739_s15 }
 0x510   : > { %s901_s9 = smov %s727_s12  ;;  %16 = sbr.rel (!%p14_p4) target bundleno = 5 (0x5), region = 69 }
 0x517   :  { %418 = vsyncpa [#allocation4], 1 }
 0x518   :  { %420 = vsyncpa [#allocation4 + $0x1], 1 }
 0x519   :  { %421 = vsyncpa [#allocation5], 1 }
 0x51a   :  { %423 = vsyncpa [#allocation5 + $0x1], 1 }

// kernel: transformer_lm_forward.13
= control target key start
LH: loop header
LB: loop body
LE: loop exit
PB: predicated region body
PF: predicated region fallthrough
CT: control target
= control target key end

     0   :  { %10 = vsyncpa [#allocation5], 0  ;;  %s811_s0 = inlined_call_operand.hbm [shape: f32[16,32], index: 0, kind: input, shape index: {}]   ;;  %s812_s1 = inlined_call_operand.hbm [shape: f32[1,32], index: 1, kind: input, shape index: {}]   ;;  %s813_s2 = inlined_call_operand.hbm [shape: bf16[64,32], index: 2, kind: input, shape index: {}]   ;;  %s814_s3 = inlined_call_operand.hbm [shape: bf16[64,32], index: 3, kind: input, shape index: {}]   ;;  %s815_s4 = inlined_call_operand.hbm [shape: bf16[32,64], index: 4, kind: input, shape index: {}]   ;;  %s816_s5 = inlined_call_operand.hbm [shape: f32[16,32], index: 5, kind: output, shape index: {}]  }
   0x1   :  { %11 = vsyncpa [#allocation8], 0 }
   0x2   :  { %12 = vsyncpa [#allocation11], 0 }
   0x3   :  { %13 = vsyncpa [#allocation6], 0  ;;  %s645_s18 = smov [#allocation7]   ;;  %s505_s22 = scalar_lea.hbm %s812_s1, 16 }
   0x4   :  { %s32_s19 = sshll.u32 %s645_s18, 4  ;;  %p506_p0 = scmp.ne.s32.totalorder %s812_s1, %s505_s22  ;;  %s33_s19 = int_to_ptr.vmem [resolvable:$true] %s32_s19 }
   0x5   :  { %p509_p1 = scmp.lt.u32.totalorder %s505_s22, %s812_s1 }
   0x7   :  { %p511_p2 = pnand %p509_p1, %p506_p0 }
   0x9   :  { %514 = shalt.err (!%p511_p2)
}
   0xa   :  { %s515_s27 = scalar_lea.vmem %s33_s19, 16  ;;  %s519_s28 = scalar_lea.vmem %s33_s19, 32 }
   0xb   :  { %p516_p3 = scmp.ne.s32.totalorder %s33_s19, %s515_s27  ;;  %p520_p4 = scmp.lt.s32.totalorder %s33_s19, %s33_s19 }
   0xc   :  { %p521_p5 = scmp.lt.s32.totalorder %s519_s28, %s515_s27 }
   0xe   :  { %p522_p6 = por %p521_p5, %p520_p4 }
  0x10   :  { %p523_p7 = pnand %p522_p6, %p516_p3 }
  0x12   :  { %526 = shalt.err (!%p523_p7)
}
  0x13   :  { %35 = dma.hbm_to_vmem [thread:$0]  %s812_s1, 16, %s33_s19, [#allocation8]  }
  0x14   :  { %s646_s6 = smov [#allocation10]   ;;  %s647_s8 = smov [#allocation4]  }
  0x15   :  { %s53_s7 = sshll.u32 %s646_s6, 4  ;;  %s19_s9 = sshll.u32 %s647_s8, 4  ;;  %s54_s7 = int_to_ptr.vmem [resolvable:$true] %s53_s7  ;;  %s20_s9 = int_to_ptr.vmem [resolvable:$true] %s19_s9 }
  0x16   :  { %s527_s12 = scalar_lea.hbm %s814_s3, 512 }
  0x17   :  { %p528_p8 = scmp.ne.s32.totalorder %s814_s3, %s527_s12  ;;  %p531_p9 = scmp.lt.u32.totalorder %s527_s12, %s814_s3 }
  0x19   :  { %p533_p10 = pnand %p531_p9, %p528_p8 }
  0x1b   :  { %536 = shalt.err (!%p533_p10)
}
  0x1c   :  { %s537_s1 = scalar_lea.vmem %s54_s7, 512  ;;  %p542_p12 = scmp.lt.s32.totalorder %s54_s7, %s54_s7 }
  0x1d   :  { %p538_p11 = scmp.ne.s32.totalorder %s54_s7, %s537_s1  ;;  %p543_p13 = scmp.lt.s32.totalorder %s537_s1, %s537_s1 }
  0x1f   :  { %p544_p0 = por %p543_p13, %p542_p12 }
  0x21   :  { %p545_p1 = pnand %p544_p0, %p538_p11 }
  0x23   :  { %548 = shalt.err (!%p545_p1)
}
  0x24   :  { %s648_s17 = smov 64   ;;  %s649_s18 = smov 4  }
  0x25   :  { %59 = dma.hbm_to_vmem [thread:$0]  %s814_s3, 512, %s54_s7, [#allocation11], %s648_s17, %s648_s17, %s649_s18  }
  0x26   :  { %s549_s23 = scalar_lea.hbm %s811_s0, 256 }
  0x27   :  { %p550_p2 = scmp.ne.s32.totalorder %s811_s0, %s549_s23  ;;  %p553_p3 = scmp.lt.u32.totalorder %s549_s23, %s811_s0 }
  0x29   :  { %p555_p4 = pnand %p553_p3, %p550_p2 }
  0x2b   :  { %558 = shalt.err (!%p555_p4)
}
  0x2c   :  { %s559_s28 = scalar_lea.vmem %s20_s9, 256  ;;  %p564_p6 = scmp.lt.s32.totalorder %s20_s9, %s20_s9 }
  0x2d   :  { %p560_p5 = scmp.ne.s32.totalorder %s20_s9, %s559_s28  ;;  %p565_p7 = scmp.lt.s32.totalorder %s559_s28, %s559_s28 }
  0x2f   :  { %p566_p8 = por %p565_p7, %p564_p6 }
  0x31   :  { %p567_p9 = pnand %p566_p8, %p560_p5 }
  0x33   :  { %570 = shalt.err (!%p567_p9)
}
  0x34   :  { %s650_s3 = smov 128   ;;  %s651_s29 = smov 8  }
  0x35   :  { %25 = dma.hbm_to_vmem [thread:$0]  %s811_s0, 256, %s20_s9, [#allocation5], %s650_s3, %s650_s3, %s651_s29  }
  0x36   :  { %s652_s7 = smov [#allocation9]   ;;  %s653_s10 = smov [#allocation12]  }
  0x37   :  { %s41_s8 = sshll.u32 %s652_s7, 4  ;;  %s65_s11 = sshll.u32 %s653_s10, 4  ;;  %s42_s8 = int_to_ptr.vmem [resolvable:$true] %s41_s8  ;;  %s66_s11 = int_to_ptr.vmem [resolvable:$true] %s65_s11 }
  0x38   :  { %s571_s14 = scalar_lea.hbm %s813_s2, 512 }
  0x39   :  { %p572_p10 = scmp.ne.s32.totalorder %s813_s2, %s571_s14  ;;  %p575_p11 = scmp.lt.u32.totalorder %s571_s14, %s813_s2 }
  0x3b   :  { %p577_p12 = pnand %p575_p11, %p572_p10 }
  0x3d   :  { %580 = shalt.err (!%p577_p12)
}
  0x3e   :  { %s581_s0 = scalar_lea.vmem %s42_s8, 512  ;;  %p586_p0 = scmp.lt.s32.totalorder %s42_s8, %s42_s8 }
  0x3f   :  { %p582_p13 = scmp.ne.s32.totalorder %s42_s8, %s581_s0  ;;  %p587_p1 = scmp.lt.s32.totalorder %s581_s0, %s581_s0 }
  0x41   :  { %p588_p2 = por %p587_p1, %p586_p0 }
  0x43   :  { %p589_p3 = pnand %p588_p2, %p582_p13 }
  0x45   :  { %592 = shalt.err (!%p589_p3)
}
  0x46   :  { %47 = dma.hbm_to_vmem [thread:$0]  %s813_s2, 512, %s42_s8, [#allocation8], %s648_s17, %s648_s17, %s649_s18  }
  0x47   :  { %s593_s23 = scalar_lea.hbm %s815_s4, 256 }
  0x48   :  { %p594_p4 = scmp.ne.s32.totalorder %s815_s4, %s593_s23  ;;  %p597_p5 = scmp.lt.u32.totalorder %s593_s23, %s815_s4 }
  0x4a   :  { %p599_p6 = pnand %p597_p5, %p594_p4 }
  0x4c   :  { %602 = shalt.err (!%p599_p6)
}
  0x4d   :  { %s603_s28 = scalar_lea.vmem %s66_s11, 256  ;;  %p608_p8 = scmp.lt.s32.totalorder %s66_s11, %s66_s11 }
  0x4e   :  { %p604_p7 = scmp.ne.s32.totalorder %s66_s11, %s603_s28  ;;  %p609_p9 = scmp.lt.s32.totalorder %s603_s28, %s603_s28 }
  0x50   :  { %p610_p10 = por %p609_p9, %p608_p8 }
  0x52   :  { %p611_p11 = pnand %p610_p10, %p604_p7 }
  0x54   :  { %614 = shalt.err (!%p611_p11)
}
  0x55   :  { %71 = dma.hbm_to_vmem [thread:$0]  %s815_s4, 256, %s66_s11, [#allocation11], %s648_s17, %s648_s17, %s649_s18  }
  0x56   :  { %637 = dma.done.wait [#allocation5], 256  }
  0x57   :  { %638 = vsyncadd [#allocation5], 4294967040 }
  0x58   :  { %639 = dma.done.wait [#allocation8], 528  }
  0x59   :  { %640 = vsyncadd [#allocation8], 4294966768 }
  0x5a   :  { %641 = dma.done.wait [#allocation11], 768  }
  0x5b   :  { %642 = vsyncadd [#allocation11], 4294966528  ;;  %v759_v0 = vld [vmem:[#allocation4] sm:$0xff]  ;;  %vm96_vm0 = vcmask 261120   ;;  %v761_v1 = vld [vmem:[#allocation4 + $0x8] sm:$0xff]  ;;  %v654_v8 = vmov 0.0  }
  0x5c   :  { %v94_v2 = vmul.f32 %v759_v0, %v759_v0  ;;  %v95_v3 = vmul.f32 %v761_v1, %v761_v1  ;;  %v483_v6 = vld [vmem:[#allocation9] sm:$0xff]   ;;  %439 = vmatprep.subr.bf16.mxu0 %v654_v8  ;;  %123 = vst.msk [vmem:[#allocation3] sm:$0xff] %vm96_vm0, %v654_v8  ;;  %124 = vst.msk [vmem:[#allocation3 + $0x8] sm:$0xff] %vm96_vm0, %v654_v8  ;;  %451 = vmatprep.subr.bf16.mxu1 %v654_v8  ;;  %v485_v11 = vld [vmem:[#allocation9 + $0x8] sm:$0xff]   ;;  %vm655_vm1 = vmmov 0   ;;  %vm325_vm2 = vcmask 523264  }
  0x5d   :  { %v484_v7 = vld [vmem:[#allocation10] sm:$0xff]   ;;  %v159_v9 = vsel %vm96_vm0, %v483_v6, 0  ;;  %v486_v12 = vld [vmem:[#allocation10 + $0x8] sm:$0xff]   ;;  %v162_v13 = vsel %vm96_vm0, %v485_v11, 0  ;;  %v487_v15 = vld [vmem:[#allocation9 + $0x10] sm:$0xff]   ;;  %447 = vmatprep.mubr.msk.bf16.mxu0 %vm655_vm1, %v654_v8  ;;  %459 = vmatprep.mubr.msk.bf16.mxu1 %vm655_vm1, %v654_v8  ;;  %s656_s4 = smov [#allocation13]  }
  0x5e   :  { %v97_v4 = vsel %vm96_vm0, %v94_v2, 0.0  ;;  %v100_v5 = vsel %vm96_vm0, %v95_v3, 0.0  ;;  %v240_v10 = vsel %vm96_vm0, %v484_v7, 0  ;;  %440 = vmatpush3.bf16.xpose.msra.mxu0 %v159_v9  ;;  %v243_v14 = vsel %vm96_vm0, %v486_v12, 0  ;;  %v488_v16 = vld [vmem:[#allocation10 + $0x10] sm:$0xff]   ;;  %v489_v19 = vld [vmem:[#allocation9 + $0x18] sm:$0xff]  }
  0x5f   :  { %98 = vadd.xlane.f32.xlu0 %v97_v4  ;;  %452 = vmatpush3.bf16.xpose.msra.mxu1 %v240_v10  ;;  %v165_v17 = vsel %vm96_vm0, %v487_v15, 0  ;;  %v246_v18 = vsel %vm96_vm0, %v488_v16, 0  ;;  %v490_v20 = vld [vmem:[#allocation10 + $0x18] sm:$0xff]   ;;  %v168_v21 = vsel %vm96_vm0, %v489_v19, 0  ;;  %v491_v38 = vld [vmem:[#allocation12] sm:$0xff]   ;;  %v492_v40 = vld [vmem:[#allocation12 + $0x8] sm:$0xff]  }
  0x60   :  { %441 = vmatprep.subr.bf16.mxu0 %v654_v8  ;;  %453 = vmatprep.subr.bf16.mxu1 %v654_v8  ;;  %v249_v22 = vsel %vm96_vm0, %v490_v20, 0  ;;  %v410_v32 = vld [vmem:[#allocation7] ss:$0 sm:$0xff]  ;;  %v330_v39 = vsel %vm325_vm2, %v491_v38, 0  ;;  %v333_v41 = vsel %vm325_vm2, %v492_v40, 0  ;;  %s396_s17 = sshll.u32 %s656_s4, 4  ;;  %s397_s17 = int_to_ptr.vmem [resolvable:$true] %s396_s17 }
  0x61   :  { %s615_s18 = scalar_lea.vmem %s397_s17, 256  ;;  %p620_p13 = scmp.lt.s32.totalorder %s397_s17, %s397_s17 }
  0x62   :  { %p616_p12 = scmp.ne.s32.totalorder %s397_s17, %s615_s18  ;;  %p621_p0 = scmp.lt.s32.totalorder %s615_s18, %s615_s18 }
  0x63   :  { %101 = vadd.xlane.f32.xlu0 %v100_v5  ;;  %v308_v63 = vld [vmem:[#allocation3] sm:$0xff]  ;;  %v309_v3 = vld [vmem:[#allocation3 + $0x8] sm:$0xff] }
  0x64   :  { %p622_p1 = por %p621_p0, %p620_p13 }
  0x66   :  { %442 = vmatpush3.bf16.xpose.msra.mxu0 %v162_v13  ;;  %p623_p2 = pnand %p622_p1, %p616_p12 }
  0x67   :  { %454 = vmatpush3.bf16.xpose.msra.mxu1 %v243_v14  ;;  %443 = vmatprep.subr.bf16.mxu0 %v654_v8 }
  0x68   :  { %455 = vmatprep.subr.bf16.mxu1 %v654_v8 }
  0x6e   :  { %444 = vmatpush3.bf16.xpose.msra.mxu0 %v165_v17 }
  0x6f   :  { %456 = vmatpush3.bf16.xpose.msra.mxu1 %v246_v18  ;;  %445 = vmatprep.subr.bf16.mxu0 %v654_v8 }
  0x70   :  { %457 = vmatprep.subr.bf16.mxu1 %v654_v8 }
  0x76   :  { %446 = vmatpush3.bf16.xpose.msra.mxu0 %v168_v21 }
  0x77   :  { %458 = vmatpush3.bf16.xpose.msra.mxu1 %v249_v22  ;;  %463 = vmatprep.subr.bf16.mxu0 %v654_v8 }
  0xec   :  { %v99_v23 = vpop.xlane.xlu0 %98 }
  0xed   :  { %v104_v24 = vmul.f32 0.03125, %v99_v23 }
  0xef   :  { %v106_v25 = vadd.f32 1e-05, %v104_v24 }
  0xf0   :  { %v102_v26 = vpop.xlane.xlu0 %101 }
  0xf1   :  { %493 = vrsqrt.f32 %v106_v25  ;;  %v105_v27 = vmul.f32 0.03125, %v102_v26 }
  0xf3   :  { %v107_v28 = vadd.f32 1e-05, %v105_v27 }
  0xf5   :  { %495 = vrsqrt.f32 %v107_v28 }
  0xfb   :  { %v494_v29 = vpop.eup %493 }
  0xfc   :  { %v110_v30 = vmul.f32 %v494_v29, %v759_v0 }
  0xfe   :  { %v119_v34 = vmul.f32 %v410_v32, %v110_v30 }
  0xff   :  { %v496_v31 = vpop.eup %495 }
 0x100   :  { %v111_v33 = vmul.f32 %v496_v31, %v761_v1 }
 0x102   :  { %v120_v35 = vmul.f32 %v410_v32, %v111_v33 }
 0x104   :  { %v121_v36 = vpack.c.bf16 %v120_v35, %v119_v34 }
 0x106   :  { %122 = vst.msk [vmem:[#allocation2] sm:$0xff] %vm96_vm0, %v121_v36 }
 0x10d   :  { %v125_v37 = vld [vmem:[#allocation2] sm:$0xff] }
 0x10e   :  { %448 = vmatmul.mubr.msk.bf16.vlgmr.msra.gmra.mrb[0].mxu0 %vm96_vm0, %v125_v37  ;;  %460 = vmatmul.mubr.msk.bf16.vlgmr.msra.gmra.mrb[0].mxu1 %vm96_vm0, %v125_v37 }
 0x10f   :  { %467 = vmatprep.mubr.msk.bf16.mxu0 %vm655_vm1, %v654_v8  ;;  %464 = vmatpush3.bf16.xpose.msra.mxu0 %v330_v39 }
 0x110   :  { %465 = vmatprep.subr.bf16.mxu0 %v654_v8 }
 0x117   :  { %466 = vmatpush3.bf16.xpose.msra.mxu0 %v333_v41 }
 0x1e1   :  { %v204_v42 = vpop.f32.mrb[0].mxu0  ;;  %v285_v43 = vpop.f32.mrb[0].mxu1 }
 0x1e2   :  { %v421_v44 = vmul.f32 -1.442695, %v204_v42  ;;  %v449_v45 = vpop.f32.mrb[1].mxu0  ;;  %v461_v46 = vpop.f32.mrb[1].mxu1 }
 0x1e3   :  { %v207_v47 = vpop.f32.mrb[2].mxu0  ;;  %v288_v48 = vpop.f32.mrb[2].mxu1 }
 0x1e4   :  { %497 = vpow2.f32 %v421_v44  ;;  %v422_v49 = vmul.f32 -1.442695, %v207_v47  ;;  %v450_v50 = vpop.f32.mrb[3].mxu0  ;;  %v462_v51 = vpop.f32.mrb[3].mxu1 }
 0x1e6   :  { %499 = vpow2.f32 %v422_v49 }
 0x1ee   :  { %v498_v52 = vpop.eup %497 }
 0x1ef   :  { %v298_v53 = vadd.f32 1.0, %v498_v52 }
 0x1f0   :  { %v500_v54 = vpop.eup %499 }
 0x1f1   :  { %501 = vrcp.f32 %v298_v53  ;;  %v299_v55 = vadd.f32 1.0, %v500_v54 }
 0x1f3   :  { %503 = vrcp.f32 %v299_v55 }
 0x1fb   :  { %v502_v56 = vpop.eup %501 }
 0x1fc   :  { %v304_v57 = vmul.f32 %v502_v56, %v204_v42 }
 0x1fd   :  { %v504_v58 = vpop.eup %503 }
 0x1fe   :  { %v306_v59 = vmul.f32 %v304_v57, %v285_v43  ;;  %v305_v60 = vmul.f32 %v504_v58, %v207_v47 }
 0x200   :  { %v307_v61 = vmul.f32 %v305_v60, %v288_v48 }
 0x202   :  { %v310_v62 = vpack.c.bf16 %v307_v61, %v306_v59 }
 0x204   :  { %468 = vmatmul.mubr.msk.bf16.vlgmr.msra.gmra.mrb[4].mxu0 %vm325_vm2, %v310_v62 }
 0x2d7   :  { %v369_v2 = vpop.f32.mrb[4].mxu0 }
 0x2d8   :  { %v376_v4 = vadd.f32 %v369_v2, %v308_v63  ;;  %v469_v5 = vpop.f32.mrb[5].mxu0 }
 0x2d9   :  { %v372_v6 = vpop.f32.mrb[6].mxu0 }
 0x2da   :  { %378 = vst.msk [vmem:[#allocation3] sm:$0xff] %vm96_vm0, %v376_v4  ;;  %v377_v7 = vadd.f32 %v372_v6, %v309_v3  ;;  %v470_v8 = vpop.f32.mrb[7].mxu0 }
 0x2dc   :  { %379 = vst.msk [vmem:[#allocation3 + $0x8] sm:$0xff] %vm96_vm0, %v377_v7 }
 0x2e1   :  { %v385_v9 = vld [vmem:[#allocation3] sm:$0xff] }
 0x2e2   :  { %v387_v10 = vadd.f32 %v385_v9, %v759_v0 }
 0x2e3   :  { %v386_v11 = vld [vmem:[#allocation3 + $0x8] sm:$0xff] }
 0x2e4   :  { %v388_v12 = vadd.f32 %v386_v11, %v761_v1  ;;  %389 = vst.msk [vmem:[#allocation13] sm:$0xff] %vm96_vm0, %v387_v10 }
 0x2e6   :  { %390 = vst.msk [vmem:[#allocation13 + $0x8] sm:$0xff] %vm96_vm0, %v388_v12 }
 0x2e7   :  { %626 = shalt.err (!%p623_p2)
}
 0x2e8   :  { %s627_s8 = scalar_lea.hbm %s816_s5, 256 }
 0x2e9   :  { %p628_p3 = scmp.ne.s32.totalorder %s816_s5, %s627_s8  ;;  %p631_p4 = scmp.lt.u32.totalorder %s627_s8, %s816_s5 }
 0x2eb   :  { %p633_p5 = pnand %p631_p4, %p628_p3 }
 0x2ed   :  { %636 = shalt.err (!%p633_p5)
}
 0x2ee   :  { %402 = dma.vmem_to_hbm [thread:$0]  %s397_s17, 256, %s816_s5, [#allocation6], %s650_s3, %s650_s3, %s651_s29  }
 0x2ef   :  { %643 = dma.done.wait [#allocation6], 256  }
 0x2f0   :  { %644 = vsyncadd [#allocation6], 4294967040 }
 0x2f1   :  { %406 = vsyncpa [#allocation5], 1 }
 0x2f2   :  { %407 = vsyncpa [#allocation8], 1 }
 0x2f3   :  { %408 = vsyncpa [#allocation11], 1 }
 0x2f4   :  { %409 = vsyncpa [#allocation6], 1 }

// kernel: transformer_lm_forward.18
= control target key start
LH: loop header
LB: loop body
LE: loop exit
PB: predicated region body
PF: predicated region fallthrough
CT: control target
= control target key end

     0   :  { %7 = vsyncpa [#allocation3], 0  ;;  %s242_s0 = inlined_call_operand.hbm [shape: f32[16,32], index: 0, kind: input, shape index: {}]   ;;  %s243_s1 = inlined_call_operand.hbm [shape: f32[1,32], index: 1, kind: input, shape index: {}]   ;;  %s244_s2 = inlined_call_operand.hbm [shape: bf16[16,32], index: 2, kind: output, shape index: {}]  }
   0x1   :  { %8 = vsyncpa [#allocation6], 0 }
   0x2   :  { %9 = vsyncpa [#allocation4], 0  ;;  %s184_s9 = smov [#allocation2]   ;;  %s112_s13 = scalar_lea.hbm %s242_s0, 256 }
   0x3   :  { %s15_s10 = sshll.u32 %s184_s9, 4  ;;  %p113_p0 = scmp.ne.s32.totalorder %s242_s0, %s112_s13  ;;  %s16_s10 = int_to_ptr.vmem [resolvable:$true] %s15_s10 }
   0x4   :  { %p116_p1 = scmp.lt.u32.totalorder %s112_s13, %s242_s0 }
   0x6   :  { %p118_p2 = pnand %p116_p1, %p113_p0 }
   0x8   :  { %121 = shalt.err (!%p118_p2)
}
   0x9   :  { %s122_s18 = scalar_lea.vmem %s16_s10, 256  ;;  %p127_p4 = scmp.lt.s32.totalorder %s16_s10, %s16_s10 }
   0xa   :  { %p123_p3 = scmp.ne.s32.totalorder %s16_s10, %s122_s18  ;;  %p128_p5 = scmp.lt.s32.totalorder %s122_s18, %s122_s18 }
   0xc   :  { %p129_p6 = por %p128_p5, %p127_p4 }
   0xe   :  { %p130_p7 = pnand %p129_p6, %p123_p3 }
  0x10   :  { %133 = shalt.err (!%p130_p7)
}
  0x11   :  { %s185_s19 = smov 128   ;;  %s186_s20 = smov 8  }
  0x12   :  { %21 = dma.hbm_to_vmem [thread:$0]  %s242_s0, 256, %s16_s10, [#allocation3], %s185_s19, %s185_s19, %s186_s20  }
  0x13   :  { %s187_s23 = smov [#allocation5]   ;;  %s134_s27 = scalar_lea.hbm %s243_s1, 16 }
  0x14   :  { %s28_s24 = sshll.u32 %s187_s23, 4  ;;  %p135_p8 = scmp.ne.s32.totalorder %s243_s1, %s134_s27  ;;  %s29_s24 = int_to_ptr.vmem [resolvable:$true] %s28_s24 }
  0x15   :  { %p138_p9 = scmp.lt.u32.totalorder %s134_s27, %s243_s1 }
  0x17   :  { %p140_p10 = pnand %p138_p9, %p135_p8 }
  0x19   :  { %143 = shalt.err (!%p140_p10)
}
  0x1a   :  { %s144_s4 = scalar_lea.vmem %s29_s24, 16  ;;  %s148_s0 = scalar_lea.vmem %s29_s24, 32 }
  0x1b   :  { %p145_p11 = scmp.ne.s32.totalorder %s29_s24, %s144_s4  ;;  %p149_p12 = scmp.lt.s32.totalorder %s29_s24, %s29_s24 }
  0x1c   :  { %p150_p13 = scmp.lt.s32.totalorder %s148_s0, %s144_s4 }
  0x1e   :  { %p151_p0 = por %p150_p13, %p149_p12 }
  0x20   :  { %p152_p1 = pnand %p151_p0, %p145_p11 }
  0x22   :  { %155 = shalt.err (!%p152_p1)
}
  0x23   :  { %31 = dma.hbm_to_vmem [thread:$0]  %s243_s1, 16, %s29_s24, [#allocation6]  }
  0x24   :  { %178 = dma.done.wait [#allocation3], 256  }
  0x25   :  { %179 = vsyncadd [#allocation3], 4294967040 }
  0x26   :  { %180 = dma.done.wait [#allocation6], 16  }
  0x27   :  { %181 = vsyncadd [#allocation6], 4294967280  ;;  %v38_v0 = vld [vmem:[#allocation2] sm:$0xff]  ;;  %vm42_vm0 = vcmask 261120   ;;  %v39_v1 = vld [vmem:[#allocation2 + $0x8] sm:$0xff]  ;;  %vm75_vm1 = vcmask 257024  }
  0x28   :  { %v40_v2 = vmul.f32 %v38_v0, %v38_v0  ;;  %v41_v3 = vmul.f32 %v39_v1, %v39_v1  ;;  %v96_v13 = vld [vmem:[#allocation5] ss:$0 sm:$0xff]  ;;  %s188_s1 = smov [#allocation7]  }
  0x29   :  { %s83_s7 = sshll.u32 %s188_s1, 4  ;;  %s84_s7 = int_to_ptr.vmem [resolvable:$true] %s83_s7 }
  0x2a   :  { %v43_v4 = vsel %vm42_vm0, %v40_v2, 0.0  ;;  %v46_v5 = vsel %vm42_vm0, %v41_v3, 0.0  ;;  %s156_s8 = scalar_lea.vmem %s84_s7, 128  ;;  %p161_p3 = scmp.lt.s32.totalorder %s84_s7, %s84_s7 }
  0x2b   :  { %44 = vadd.xlane.f32.xlu0 %v43_v4  ;;  %p157_p2 = scmp.ne.s32.totalorder %s84_s7, %s156_s8  ;;  %p162_p4 = scmp.lt.s32.totalorder %s156_s8, %s156_s8 }
  0x2d   :  { %p163_p5 = por %p162_p4, %p161_p3 }
  0x2f   :  { %47 = vadd.xlane.f32.xlu0 %v46_v5  ;;  %p164_p6 = pnand %p163_p5, %p157_p2 }
  0xb8   :  { %v45_v6 = vpop.xlane.xlu0 %44 }
  0xb9   :  { %v50_v7 = vmul.f32 0.03125, %v45_v6 }
  0xbb   :  { %v52_v8 = vadd.f32 1e-05, %v50_v7 }
  0xbc   :  { %v48_v9 = vpop.xlane.xlu0 %47 }
  0xbd   :  { %108 = vrsqrt.f32 %v52_v8  ;;  %v51_v10 = vmul.f32 0.03125, %v48_v9 }
  0xbf   :  { %v53_v11 = vadd.f32 1e-05, %v51_v10 }
  0xc1   :  { %110 = vrsqrt.f32 %v53_v11 }
  0xc7   :  { %v109_v12 = vpop.eup %108 }
  0xc8   :  { %v56_v14 = vmul.f32 %v109_v12, %v38_v0 }
  0xca   :  { %v65_v15 = vmul.f32 %v96_v13, %v56_v14 }
  0xcb   :  { %v111_v16 = vpop.eup %110 }
  0xcc   :  { %v57_v17 = vmul.f32 %v111_v16, %v39_v1  ;;  %v99_v18 = vpack.c.bf16 %v65_v15, %v65_v15 }
  0xce   :  { %v66_v19 = vmul.f32 %v96_v13, %v57_v17  ;;  %76 = vst.msk [vmem:[#allocation7] sm:$0xf] %vm75_vm1, %v99_v18 }
  0xd0   :  { %v100_v20 = vpack.c.bf16 %v66_v19, %v66_v19 }
  0xd2   :  { %77 = vst.msk [vmem:[#allocation7 + $0x4] sm:$0xf] %vm75_vm1, %v100_v20 }
  0xd3   :  { %167 = shalt.err (!%p164_p6)
}
  0xd4   :  { %s168_s11 = scalar_lea.hbm %s244_s2, 128 }
  0xd5   :  { %p169_p7 = scmp.ne.s32.totalorder %s244_s2, %s168_s11  ;;  %p172_p8 = scmp.lt.u32.totalorder %s168_s11, %s244_s2 }
  0xd7   :  { %p174_p9 = pnand %p172_p8, %p169_p7 }
  0xd9   :  { %177 = shalt.err (!%p174_p9)
}
  0xda   :  { %s189_s16 = smov 64   ;;  %s190_s17 = smov 4  }
  0xdb   :  { %89 = dma.vmem_to_hbm [thread:$0]  %s84_s7, 128, %s244_s2, [#allocation4], %s189_s16, %s189_s16, %s190_s17  }
  0xdc   :  { %182 = dma.done.wait [#allocation4], 128  }
  0xdd   :  { %183 = vsyncadd [#allocation4], 4294967168 }
  0xde   :  { %93 = vsyncpa [#allocation3], 1 }
  0xdf   :  { %94 = vsyncpa [#allocation6], 1 }
  0xe0   :  { %95 = vsyncpa [#allocation4], 1 }

// kernel: transformer_lm_forward.19
= control target key start
LH: loop header
LB: loop body
LE: loop exit
PB: predicated region body
PF: predicated region fallthrough
CT: control target
= control target key end

     0   :  { %7 = vsyncpa [#allocation3], 0  ;;  %s391_s0 = inlined_call_operand.hbm [shape: bf16[16,32], index: 0, kind: input, shape index: {}]   ;;  %s392_s1 = inlined_call_operand.hbm [shape: bf16[128,32], index: 1, kind: input, shape index: {}]   ;;  %s393_s2 = inlined_call_operand.hbm [shape: f32[16,128], index: 2, kind: output, shape index: {}]  }
   0x1   :  { %8 = vsyncpa [#allocation6], 0 }
   0x2   :  { %9 = vsyncpa [#allocation4], 0  ;;  %s322_s9 = smov [#allocation2]   ;;  %s250_s13 = scalar_lea.hbm %s391_s0, 128 }
   0x3   :  { %s15_s10 = sshll.u32 %s322_s9, 4  ;;  %p251_p0 = scmp.ne.s32.totalorder %s391_s0, %s250_s13  ;;  %s16_s10 = int_to_ptr.vmem [resolvable:$true] %s15_s10 }
   0x4   :  { %p254_p1 = scmp.lt.u32.totalorder %s250_s13, %s391_s0 }
   0x6   :  { %p256_p2 = pnand %p254_p1, %p251_p0 }
   0x8   :  { %259 = shalt.err (!%p256_p2)
}
   0x9   :  { %s260_s18 = scalar_lea.vmem %s16_s10, 128  ;;  %p265_p4 = scmp.lt.s32.totalorder %s16_s10, %s16_s10 }
   0xa   :  { %p261_p3 = scmp.ne.s32.totalorder %s16_s10, %s260_s18  ;;  %p266_p5 = scmp.lt.s32.totalorder %s260_s18, %s260_s18 }
   0xc   :  { %p267_p6 = por %p266_p5, %p265_p4 }
   0xe   :  { %p268_p7 = pnand %p267_p6, %p261_p3 }
  0x10   :  { %271 = shalt.err (!%p268_p7)
}
  0x11   :  { %s323_s19 = smov 64   ;;  %s324_s20 = smov 4  }
  0x12   :  { %21 = dma.hbm_to_vmem [thread:$0]  %s391_s0, 128, %s16_s10, [#allocation3], %s323_s19, %s323_s19, %s324_s20  }
  0x13   :  { %s325_s23 = smov [#allocation5]   ;;  %s272_s27 = scalar_lea.hbm %s392_s1, 1024 }
  0x14   :  { %s27_s24 = sshll.u32 %s325_s23, 4  ;;  %p273_p8 = scmp.ne.s32.totalorder %s392_s1, %s272_s27  ;;  %s28_s24 = int_to_ptr.vmem [resolvable:$true] %s27_s24 }
  0x15   :  { %p276_p9 = scmp.lt.u32.totalorder %s272_s27, %s392_s1 }
  0x17   :  { %p278_p10 = pnand %p276_p9, %p273_p8 }
  0x19   :  { %281 = shalt.err (!%p278_p10)
}
  0x1a   :  { %s282_s4 = scalar_lea.vmem %s28_s24, 1024  ;;  %p287_p12 = scmp.lt.s32.totalorder %s28_s24, %s28_s24 }
  0x1b   :  { %p283_p11 = scmp.ne.s32.totalorder %s28_s24, %s282_s4  ;;  %p288_p13 = scmp.lt.s32.totalorder %s282_s4, %s282_s4 }
  0x1d   :  { %p289_p0 = por %p288_p13, %p287_p12 }
  0x1f   :  { %p290_p1 = pnand %p289_p0, %p283_p11 }
  0x21   :  { %293 = shalt.err (!%p290_p1)
}
  0x22   :  { %33 = dma.hbm_to_vmem [thread:$0]  %s392_s1, 1024, %s28_s24, [#allocation6], %s323_s19, %s323_s19, %s324_s20  }
  0x23   :  { %316 = dma.done.wait [#allocation3], 128  }
  0x24   :  { %317 = vsyncadd [#allocation3], 4294967168 }
  0x25   :  { %318 = dma.done.wait [#allocation6], 1024  }
  0x26   :  { %319 = vsyncadd [#allocation6], 4294966272  ;;  %v326_v0 = vmov 0.0   ;;  %vm327_vm0 = vmmov 0   ;;  %vm104_vm1 = vcmask 261120   ;;  %v241_v1 = vld [vmem:[#allocation5] sm:$0xff]  }
  0x27   :  { %212 = vmatprep.subr.bf16.mxu0 %v326_v0  ;;  %228 = vmatprep.mubr.msk.bf16.mxu0 %vm327_vm0, %v326_v0  ;;  %v109_v2 = vsel %vm104_vm1, %v241_v1, 0  ;;  %v242_v3 = vld [vmem:[#allocation5 + $0x8] sm:$0xff]   ;;  %v243_v5 = vld [vmem:[#allocation5 + $0x10] sm:$0xff]   ;;  %v244_v7 = vld [vmem:[#allocation5 + $0x18] sm:$0xff]   ;;  %s328_s1 = smov [#allocation7]  }
  0x28   :  { %213 = vmatpush3.bf16.xpose.msra.mxu0 %v109_v2  ;;  %v112_v4 = vsel %vm104_vm1, %v242_v3, 0  ;;  %v115_v6 = vsel %vm104_vm1, %v243_v5, 0  ;;  %v118_v8 = vsel %vm104_vm1, %v244_v7, 0  ;;  %v245_v9 = vld [vmem:[#allocation5 + $0x20] sm:$0xff]   ;;  %v246_v11 = vld [vmem:[#allocation5 + $0x28] sm:$0xff]   ;;  %v247_v13 = vld [vmem:[#allocation5 + $0x30] sm:$0xff]  }
  0x29   :  { %214 = vmatprep.subr.bf16.mxu0 %v326_v0  ;;  %v121_v10 = vsel %vm104_vm1, %v245_v9, 0  ;;  %v124_v12 = vsel %vm104_vm1, %v246_v11, 0  ;;  %v127_v14 = vsel %vm104_vm1, %v247_v13, 0  ;;  %v248_v15 = vld [vmem:[#allocation5 + $0x38] sm:$0xff]   ;;  %s180_s6 = sshll.u32 %s328_s1, 4  ;;  %s181_s6 = int_to_ptr.vmem [resolvable:$true] %s180_s6 }
  0x2a   :  { %v130_v16 = vsel %vm104_vm1, %v248_v15, 0  ;;  %v249_v17 = vld [vmem:[#allocation2] sm:$0xff]   ;;  %s294_s7 = scalar_lea.vmem %s181_s6, 256  ;;  %p299_p3 = scmp.lt.s32.totalorder %s181_s6, %s181_s6 }
  0x2b   :  { %p295_p2 = scmp.ne.s32.totalorder %s181_s6, %s294_s7  ;;  %p300_p4 = scmp.lt.s32.totalorder %s294_s7, %s294_s7 }
  0x2d   :  { %p301_p5 = por %p300_p4, %p299_p3 }
  0x2f   :  { %p302_p6 = pnand %p301_p5, %p295_p2 }
  0x30   :  { %215 = vmatpush3.bf16.xpose.msra.mxu0 %v112_v4 }
  0x31   :  { %216 = vmatprep.subr.bf16.mxu0 %v326_v0 }
  0x38   :  { %217 = vmatpush3.bf16.xpose.msra.mxu0 %v115_v6 }
  0x39   :  { %218 = vmatprep.subr.bf16.mxu0 %v326_v0 }
  0x40   :  { %219 = vmatpush3.bf16.xpose.msra.mxu0 %v118_v8 }
  0x41   :  { %220 = vmatprep.subr.bf16.mxu0 %v326_v0 }
  0x48   :  { %221 = vmatpush3.bf16.xpose.msra.mxu0 %v121_v10 }
  0x49   :  { %222 = vmatprep.subr.bf16.mxu0 %v326_v0 }
  0x50   :  { %223 = vmatpush3.bf16.xpose.msra.mxu0 %v124_v12 }
  0x51   :  { %224 = vmatprep.subr.bf16.mxu0 %v326_v0 }
  0x58   :  { %225 = vmatpush3.bf16.xpose.msra.mxu0 %v127_v14 }
  0x59   :  { %226 = vmatprep.subr.bf16.mxu0 %v326_v0 }
  0x60   :  { %227 = vmatpush3.bf16.xpose.msra.mxu0 %v130_v16 }
  0x67   :  { %229 = vmatmul.mubr.msk.bf16.vlgmr.msra.gmra.mrb[0].mxu0 %vm104_vm1, %v249_v17 }
 0x13a   :  { %v166_v18 = vpop.f32.mrb[0].mxu0 }
 0x13b   :  { %173 = vst [vmem:[#allocation7] sm:$0xff] %v166_v18  ;;  %v230_v19 = vpop.f32.mrb[1].mxu0 }
 0x13c   :  { %v169_v20 = vpop.f32.mrb[2].mxu0 }
 0x13d   :  { %174 = vst [vmem:[#allocation7 + $0x8] sm:$0xff] %v169_v20  ;;  %v231_v21 = vpop.f32.mrb[3].mxu0 }
 0x13e   :  { %305 = shalt.err (!%p302_p6)
}
 0x13f   :  { %s306_s10 = scalar_lea.hbm %s393_s2, 256 }
 0x140   :  { %p307_p7 = scmp.ne.s32.totalorder %s393_s2, %s306_s10  ;;  %p310_p8 = scmp.lt.u32.totalorder %s306_s10, %s393_s2 }
 0x142   :  { %p312_p9 = pnand %p310_p8, %p307_p7 }
 0x144   :  { %315 = shalt.err (!%p312_p9)
}
 0x145   :  { %s329_s15 = smov 128   ;;  %s330_s16 = smov 8  }
 0x146   :  { %186 = dma.vmem_to_hbm [thread:$0]  %s181_s6, 256, %s393_s2, [#allocation4], %s329_s15, %s329_s15, %s330_s16  }
 0x147   :  { %320 = dma.done.wait [#allocation4], 256  }
 0x148   :  { %321 = vsyncadd [#allocation4], 4294967040 }
 0x149   :  { %190 = vsyncpa [#allocation3], 1 }
 0x14a   :  { %191 = vsyncpa [#allocation6], 1 }
 0x14b   :  { %192 = vsyncpa [#allocation4], 1 }

</bundles_post_ra>
